<compile_context>
chip_gen: v6e
topology: v6e:2x2x1
jax: 0.10.0
libtpu: 0.0.40
codegen_flags: <defaults>
</compile_context>

<pallas_src>
import jax
import jax.numpy as jnp
from jax.experimental import pallas as pl
from jax.experimental.pallas import tpu as pltpu

# ----------------------------- problem sizes -----------------------------
B = 2              # batch
CIN = 3            # image channels (RGB)
IMG = 16           # spatial H = W
HW = IMG * IMG
COUT = 8           # conv output channels
EMBED = 32         # embed_size
HID = 32           # lstm_hid_dim (small demo size; module default is 256)
GATES = 4 * HID    # 128 -> exactly fills the 128-lane dimension
VOCAB = 32         # vocab size
T = 8              # caption length
T1 = T + 1         # +1 for the CNN feature prepended as the first LSTM input

_F32 = jnp.float32
_VMEM_SPEC = pl.BlockSpec(memory_space=pltpu.MemorySpace.VMEM)


# ----------------------------- fused Pallas kernel -----------------------------
def fused_caption_kernel(patches_ref, pool_ref, conv_w_ref, conv_b_ref,
                         enc_w_ref, enc_b_ref, emb_ref, wih_ref, whh_ref,
                         lstm_b_ref, fcw_ref, fcb_ref, out_ref, h_all):
    """CNN encoder + LSTM decoder + vocab head in one launch.

    patches_ref: (B*HW, 9*Cin)  im2col patches (NHWC ordering)
    pool_ref   : (B, B*HW)      per-batch global-average-pool matrix
    conv_w_ref : (9*Cin, Cout)  conv_b_ref: (1, Cout)
    enc_w_ref  : (Cout, E)      enc_b_ref : (1, E)
    emb_ref    : (T, B, E)      time-major caption embeddings
    wih_ref    : (E, 4H)        whh_ref: (H, 4H)   lstm_b_ref: (1, 4H)  [gate order i,f,g,o]
    fcw_ref    : (H, V)         fcb_ref: (1, V)
    out_ref    : (B*T1, V)      batch-major flattened logits (row = b*T1 + t)
    h_all      : (B*T1, H)      VMEM scratch holding every hidden state (batch-major)
    """
    # ---- encoder: one batched conv matmul + ReLU + GAP(as matmul) + FC ----
    conv = jnp.dot(patches_ref[...], conv_w_ref[...],
                   preferred_element_type=jnp.float32) + conv_b_ref[...]
    conv = jnp.maximum(conv, 0.0)                                       # ReLU
    pooled = jnp.dot(pool_ref[...], conv,
                     preferred_element_type=jnp.float32)                # (B, Cout)
    feats = jnp.dot(pooled, enc_w_ref[...],
                    preferred_element_type=jnp.float32) + enc_b_ref[...]  # (B, E)

    # ---- hoist loop-invariant weight/bias loads & the bias broadcast ----
    wih = wih_ref[...]                                    # (E, 4H)
    whh = whh_ref[...]                                    # (H, 4H)
    bias = jnp.broadcast_to(lstm_b_ref[...], (B, GATES))  # (B, 4H), broadcast once

    def lstm_cell(x, h, c):
        # Single full-width matmul pair per step: (B,E)@(E,128) + (B,H)@(H,128).
        gates = (jnp.dot(x, wih, preferred_element_type=jnp.float32)
                 + jnp.dot(h, whh, preferred_element_type=jnp.float32)
                 + bias)
        i_g = jax.nn.sigmoid(gates[:, 0 * HID:1 * HID])
        f_g = jax.nn.sigmoid(gates[:, 1 * HID:2 * HID])
        g_g = jnp.tanh(gates[:, 2 * HID:3 * HID])
        o_g = jax.nn.sigmoid(gates[:, 3 * HID:4 * HID])
        c_new = f_g * c + i_g * g_g
        h_new = o_g * jnp.tanh(c_new)
        return h_new, c_new

    def write_h(t, h_new):
        # Static-offset stores to batch-major positions b*T1 + t (B, T1 tiny & static).
        for b in range(B):
            h_all[pl.ds(b * T1 + t, 1), :] = h_new[b:b + 1, :]

    # step 0: CNN features are the first LSTM input
    zeros = jnp.zeros((B, HID), jnp.float32)
    h, c = lstm_cell(feats, zeros, zeros)
    write_h(0, h)

    # steps 1..T: static Python loop -> every index below is a compile-time constant
    for t in range(1, T1):
        h, c = lstm_cell(emb_ref[t - 1], h, c)
        write_h(t, h)

    # ---- vocab projection hoisted out of the recurrence: one dense matmul + store ----
    out_ref[...] = jnp.dot(h_all[...], fcw_ref[...],
                           preferred_element_type=jnp.float32) + fcb_ref[...]


# ----------------------------- glue / wrappers -----------------------------
def _im2col_3x3(image_nchw):
    """NCHW image -> (B*H*W, 9*Cin) patches for a 3x3, pad=1, stride=1 conv."""
    x = jnp.transpose(image_nchw, (0, 2, 3, 1))                   # NHWC
    xp = jnp.pad(x, ((0, 0), (1, 1), (1, 1), (0, 0)))
    cols = []
    for kh in range(3):
        for kw in range(3):
            cols.append(xp[:, kh:kh + IMG, kw:kw + IMG, :])
    patches = jnp.concatenate(cols, axis=-1)                      # (B, H, W, 9*Cin)
    return patches.reshape(B * HW, 9 * CIN)


def _pool_matrix():
    # (B, B*HW) averaging matrix: row b has 1/HW over that batch's spatial rows.
    # Constant inside jit -> folded by XLA at compile time.
    return jnp.repeat(jnp.eye(B, dtype=_F32), HW, axis=1) / float(HW)


@jax.jit
def image_caption_forward(image_nchw, caption, params):
    patches = _im2col_3x3(image_nchw)                             # (B*HW, 9*Cin)
    emb_tm = jnp.take(params["embed"], caption.T, axis=0)         # (T, B, E)
    pool_mat = _pool_matrix()                                     # (B, B*HW)
    out_flat = pl.pallas_call(
        fused_caption_kernel,
        out_shape=jax.ShapeDtypeStruct((B * T1, VOCAB), _F32),
        in_specs=[_VMEM_SPEC] * 12,
        out_specs=_VMEM_SPEC,
        scratch_shapes=[pltpu.VMEM((B * T1, HID), _F32)],
    )(patches, pool_mat, params["conv_w"], params["conv_b"],
      params["enc_fc_w"], params["enc_fc_b"], emb_tm,
      params["w_ih"], params["w_hh"], params["lstm_b"],
      params["dec_fc_w"], params["dec_fc_b"])
    return out_flat.reshape(B, T1, VOCAB)                         # free reshape, no transpose


# ----------------------------- pure-JAX reference -----------------------------
def _reference_forward(image_nchw, caption, params):
    patches = _im2col_3x3(image_nchw)                             # (B*HW, 9*Cin)
    conv = jnp.maximum(patches @ params["conv_w"] + params["conv_b"], 0.0)
    pooled = conv.reshape(B, HW, COUT).mean(axis=1)               # (B, Cout)
    feats = pooled @ params["enc_fc_w"] + params["enc_fc_b"]      # (B, E)

    emb = jnp.take(params["embed"], caption, axis=0)              # (B, T, E)
    inputs = jnp.concatenate([feats[:, None, :], emb], axis=1)    # (B, T1, E)
    h = jnp.zeros((B, HID), _F32)
    c = jnp.zeros((B, HID), _F32)
    outs = []
    for t in range(T1):
        x = inputs[:, t, :]
        gates = x @ params["w_ih"] + h @ params["w_hh"] + params["lstm_b"]
        i_g = jax.nn.sigmoid(gates[:, 0 * HID:1 * HID])
        f_g = jax.nn.sigmoid(gates[:, 1 * HID:2 * HID])
        g_g = jnp.tanh(gates[:, 2 * HID:3 * HID])
        o_g = jax.nn.sigmoid(gates[:, 3 * HID:4 * HID])
        c = f_g * c + i_g * g_g
        h = o_g * jnp.tanh(c)
        outs.append(h @ params["dec_fc_w"] + params["dec_fc_b"])
    return jnp.stack(outs, axis=1)                                # (B, T1, V)


# ----------------------------- deterministic params -----------------------------
def init_params(key):
    ks = jax.random.split(key, 10)
    s = 0.1
    # NOTE: LSTM gate weights are stored FUSED as (E,4H)/(H,4H)/(1,4H) with
    # columns ordered i,f,g,o — preserve this order when porting PyTorch checkpoints.
    return {
        # encoder
        "conv_w":   s * jax.random.normal(ks[0], (9 * CIN, COUT), _F32),
        "conv_b":   s * jax.random.normal(ks[1], (1, COUT), _F32),
        "enc_fc_w": s * jax.random.normal(ks[2], (COUT, EMBED), _F32),
        "enc_fc_b": s * jax.random.normal(ks[3], (1, EMBED), _F32),
        # decoder
        "embed":    s * jax.random.normal(ks[4], (VOCAB, EMBED), _F32),
        "w_ih":     s * jax.random.normal(ks[5], (EMBED, GATES), _F32),
        "w_hh":     s * jax.random.normal(ks[6], (HID, GATES), _F32),
        "lstm_b":   s * jax.random.normal(ks[7], (1, GATES), _F32),
        "dec_fc_w": s * jax.random.normal(ks[8], (HID, VOCAB), _F32),
        "dec_fc_b": s * jax.random.normal(ks[9], (1, VOCAB), _F32),
    }


if __name__ == "__main__":
    key = jax.random.PRNGKey(0)
    k_img, k_cap, k_par = jax.random.split(key, 3)

    image = jax.random.normal(k_img, (B, CIN, IMG, IMG), _F32)    # NCHW like PyTorch
    caption = jax.random.randint(k_cap, (B, T), 0, VOCAB, jnp.int32)
    params = init_params(k_par)

    logits = image_caption_forward(image, caption, params)
    logits = jax.block_until_ready(logits)

    ref = _reference_forward(image, caption, params)
    assert logits.shape == (B, T1, VOCAB), logits.shape
    assert jnp.allclose(logits, ref, atol=1e-4, rtol=1e-4), \
        float(jnp.max(jnp.abs(logits - ref)))

    print("KERNEL_OK")
</pallas_src>

<mosaic_0001>
module attributes {stable_mosaic.version = 11 : i64} {
  func.func @fused_caption_kernel(%arg0: memref<512x27xf32, #tpu.memory_space<vmem>>, %arg1: memref<2x512xf32, #tpu.memory_space<vmem>>, %arg2: memref<27x8xf32, #tpu.memory_space<vmem>>, %arg3: memref<1x8xf32, #tpu.memory_space<vmem>>, %arg4: memref<8x32xf32, #tpu.memory_space<vmem>>, %arg5: memref<1x32xf32, #tpu.memory_space<vmem>>, %arg6: memref<8x2x32xf32, #tpu.memory_space<vmem>>, %arg7: memref<32x128xf32, #tpu.memory_space<vmem>>, %arg8: memref<32x128xf32, #tpu.memory_space<vmem>>, %arg9: memref<1x128xf32, #tpu.memory_space<vmem>>, %arg10: memref<32x32xf32, #tpu.memory_space<vmem>>, %arg11: memref<1x32xf32, #tpu.memory_space<vmem>>, %arg12: memref<18x32xf32, #tpu.memory_space<vmem>>, %arg13: memref<18x32xf32, #tpu.memory_space<vmem>>) attributes {dimension_semantics = [], scalar_prefetch = 0 : i64, scratch_operands = 1 : i64, tpu.core_type = #tpu.core_type<tc>} {
    %c0 = arith.constant 0 : index
    %c0_0 = arith.constant 0 : index
    %0 = vector.load %arg0[%c0, %c0_0] : memref<512x27xf32, #tpu.memory_space<vmem>>, vector<512x27xf32>
    %c0_1 = arith.constant 0 : index
    %c0_2 = arith.constant 0 : index
    %1 = vector.load %arg2[%c0_1, %c0_2] : memref<27x8xf32, #tpu.memory_space<vmem>>, vector<27x8xf32>
    %cst = arith.constant dense<0.000000e+00> : vector<512x8xf32>
    %2 = tpu.matmul %0, %1, %cst {dimension_numbers = #tpu.dot_dimension_numbers<[1], [0], [0], [1], [0, 0, 1, 1], [], []>} : vector<512x27xf32>, vector<27x8xf32>, vector<512x8xf32> -> vector<512x8xf32>
    %c0_3 = arith.constant 0 : index
    %c0_4 = arith.constant 0 : index
    %3 = vector.load %arg3[%c0_3, %c0_4] : memref<1x8xf32, #tpu.memory_space<vmem>>, vector<1x8xf32>
    %4 = vector.broadcast %3 : vector<1x8xf32> to vector<512x8xf32>
    %5 = arith.addf %2, %4 : vector<512x8xf32>
    %cst_5 = arith.constant 0.000000e+00 : f32
    %6 = vector.broadcast %cst_5 : f32 to vector<512x8xf32>
    %7 = arith.maximumf %5, %6 : vector<512x8xf32>
    %c0_6 = arith.constant 0 : index
    %c0_7 = arith.constant 0 : index
    %8 = vector.load %arg1[%c0_6, %c0_7] : memref<2x512xf32, #tpu.memory_space<vmem>>, vector<2x512xf32>
    %cst_8 = arith.constant dense<0.000000e+00> : vector<2x8xf32>
    %9 = tpu.matmul %8, %7, %cst_8 {dimension_numbers = #tpu.dot_dimension_numbers<[1], [0], [0], [1], [0, 0, 1, 1], [], []>} : vector<2x512xf32>, vector<512x8xf32>, vector<2x8xf32> -> vector<2x8xf32>
    %c0_9 = arith.constant 0 : index
    %c0_10 = arith.constant 0 : index
    %10 = vector.load %arg4[%c0_9, %c0_10] : memref<8x32xf32, #tpu.memory_space<vmem>>, vector<8x32xf32>
    %cst_11 = arith.constant dense<0.000000e+00> : vector<2x32xf32>
    %11 = tpu.matmul %9, %10, %cst_11 {dimension_numbers = #tpu.dot_dimension_numbers<[1], [0], [0], [1], [0, 0, 1, 1], [], []>} : vector<2x8xf32>, vector<8x32xf32>, vector<2x32xf32> -> vector<2x32xf32>
    %c0_12 = arith.constant 0 : index
    %c0_13 = arith.constant 0 : index
    %12 = vector.load %arg5[%c0_12, %c0_13] : memref<1x32xf32, #tpu.memory_space<vmem>>, vector<1x32xf32>
    %13 = vector.broadcast %12 : vector<1x32xf32> to vector<2x32xf32>
    %14 = arith.addf %11, %13 : vector<2x32xf32>
    %c0_14 = arith.constant 0 : index
    %c0_15 = arith.constant 0 : index
    %15 = vector.load %arg7[%c0_14, %c0_15] : memref<32x128xf32, #tpu.memory_space<vmem>>, vector<32x128xf32>
    %c0_16 = arith.constant 0 : index
    %c0_17 = arith.constant 0 : index
    %16 = vector.load %arg8[%c0_16, %c0_17] : memref<32x128xf32, #tpu.memory_space<vmem>>, vector<32x128xf32>
    %c0_18 = arith.constant 0 : index
    %c0_19 = arith.constant 0 : index
    %17 = vector.load %arg9[%c0_18, %c0_19] : memref<1x128xf32, #tpu.memory_space<vmem>>, vector<1x128xf32>
    %18 = vector.shape_cast %17 : vector<1x128xf32> to vector<1x128xf32>
    %19 = vector.broadcast %18 : vector<1x128xf32> to vector<2x128xf32>
    %cst_20 = arith.constant 0.000000e+00 : f32
    %20 = vector.broadcast %cst_20 : f32 to vector<2x32xf32>
    %cst_21 = arith.constant dense<0.000000e+00> : vector<2x128xf32>
    %21 = tpu.matmul %14, %15, %cst_21 {dimension_numbers = #tpu.dot_dimension_numbers<[1], [0], [0], [1], [0, 0, 1, 1], [], []>} : vector<2x32xf32>, vector<32x128xf32>, vector<2x128xf32> -> vector<2x128xf32>
    %cst_22 = arith.constant dense<0.000000e+00> : vector<2x128xf32>
    %22 = tpu.matmul %20, %16, %cst_22 {dimension_numbers = #tpu.dot_dimension_numbers<[1], [0], [0], [1], [0, 0, 1, 1], [], []>} : vector<2x32xf32>, vector<32x128xf32>, vector<2x128xf32> -> vector<2x128xf32>
    %23 = arith.addf %21, %22 : vector<2x128xf32>
    %24 = arith.addf %23, %19 : vector<2x128xf32>
    %25 = vector.extract_strided_slice %24 {offsets = [0, 0], sizes = [2, 32], strides = [1, 1]} : vector<2x128xf32> to vector<2x32xf32>
    %26 = arith.negf %25 : vector<2x32xf32>
    %27 = math.exp %26 : vector<2x32xf32>
    %cst_23 = arith.constant 1.000000e+00 : f32
    %28 = vector.broadcast %cst_23 : f32 to vector<2x32xf32>
    %29 = arith.addf %28, %27 : vector<2x32xf32>
    %30 = arith.divf %28, %29 : vector<2x32xf32>
    %31 = vector.extract_strided_slice %24 {offsets = [0, 32], sizes = [2, 32], strides = [1, 1]} : vector<2x128xf32> to vector<2x32xf32>
    %32 = arith.negf %31 : vector<2x32xf32>
    %33 = math.exp %32 : vector<2x32xf32>
    %cst_24 = arith.constant 1.000000e+00 : f32
    %34 = vector.broadcast %cst_24 : f32 to vector<2x32xf32>
    %35 = arith.addf %34, %33 : vector<2x32xf32>
    %36 = arith.divf %34, %35 : vector<2x32xf32>
    %37 = vector.extract_strided_slice %24 {offsets = [0, 64], sizes = [2, 32], strides = [1, 1]} : vector<2x128xf32> to vector<2x32xf32>
    %38 = math.tanh %37 : vector<2x32xf32>
    %39 = vector.extract_strided_slice %24 {offsets = [0, 96], sizes = [2, 32], strides = [1, 1]} : vector<2x128xf32> to vector<2x32xf32>
    %40 = arith.negf %39 : vector<2x32xf32>
    %41 = math.exp %40 : vector<2x32xf32>
    %cst_25 = arith.constant 1.000000e+00 : f32
    %42 = vector.broadcast %cst_25 : f32 to vector<2x32xf32>
    %43 = arith.addf %42, %41 : vector<2x32xf32>
    %44 = arith.divf %42, %43 : vector<2x32xf32>
    %45 = arith.mulf %36, %20 : vector<2x32xf32>
    %46 = arith.mulf %30, %38 : vector<2x32xf32>
    %47 = arith.addf %45, %46 : vector<2x32xf32>
    %48 = math.tanh %47 : vector<2x32xf32>
    %49 = arith.mulf %44, %48 : vector<2x32xf32>
    %50 = vector.extract_strided_slice %49 {offsets = [0, 0], sizes = [1, 32], strides = [1, 1]} : vector<2x32xf32> to vector<1x32xf32>
    %c0_26 = arith.constant 0 : index
    %c0_27 = arith.constant 0 : index
    %51 = vector.load %arg13[%c0_26, %c0_27] : memref<18x32xf32, #tpu.memory_space<vmem>>, vector<1x32xf32>
    tpu.vector_store %arg13[%c0_26, %c0_27], %50 {strides = array<i32>} : memref<18x32xf32, #tpu.memory_space<vmem>>, vector<1x32xf32>,
    %52 = vector.extract_strided_slice %49 {offsets = [1, 0], sizes = [1, 32], strides = [1, 1]} : vector<2x32xf32> to vector<1x32xf32>
    %c9 = arith.constant 9 : index
    %c0_28 = arith.constant 0 : index
    %53 = vector.load %arg13[%c9, %c0_28] : memref<18x32xf32, #tpu.memory_space<vmem>>, vector<1x32xf32>
    tpu.vector_store %arg13[%c9, %c0_28], %52 {strides = array<i32>} : memref<18x32xf32, #tpu.memory_space<vmem>>, vector<1x32xf32>,
    %c0_29 = arith.constant 0 : index
    %c0_30 = arith.constant 0 : index
    %c0_31 = arith.constant 0 : index
    %54 = vector.load %arg6[%c0_29, %c0_30, %c0_31] : memref<8x2x32xf32, #tpu.memory_space<vmem>>, vector<1x2x32xf32>
    %55 = vector.shape_cast %54 : vector<1x2x32xf32> to vector<2x32xf32>
    %cst_32 = arith.constant dense<0.000000e+00> : vector<2x128xf32>
    %56 = tpu.matmul %55, %15, %cst_32 {dimension_numbers = #tpu.dot_dimension_numbers<[1], [0], [0], [1], [0, 0, 1, 1], [], []>} : vector<2x32xf32>, vector<32x128xf32>, vector<2x128xf32> -> vector<2x128xf32>
    %cst_33 = arith.constant dense<0.000000e+00> : vector<2x128xf32>
    %57 = tpu.matmul %49, %16, %cst_33 {dimension_numbers = #tpu.dot_dimension_numbers<[1], [0], [0], [1], [0, 0, 1, 1], [], []>} : vector<2x32xf32>, vector<32x128xf32>, vector<2x128xf32> -> vector<2x128xf32>
    %58 = arith.addf %56, %57 : vector<2x128xf32>
    %59 = arith.addf %58, %19 : vector<2x128xf32>
    %60 = vector.extract_strided_slice %59 {offsets = [0, 0], sizes = [2, 32], strides = [1, 1]} : vector<2x128xf32> to vector<2x32xf32>
    %61 = arith.negf %60 : vector<2x32xf32>
    %62 = math.exp %61 : vector<2x32xf32>
    %cst_34 = arith.constant 1.000000e+00 : f32
    %63 = vector.broadcast %cst_34 : f32 to vector<2x32xf32>
    %64 = arith.addf %63, %62 : vector<2x32xf32>
    %65 = arith.divf %63, %64 : vector<2x32xf32>
    %66 = vector.extract_strided_slice %59 {offsets = [0, 32], sizes = [2, 32], strides = [1, 1]} : vector<2x128xf32> to vector<2x32xf32>
    %67 = arith.negf %66 : vector<2x32xf32>
    %68 = math.exp %67 : vector<2x32xf32>
    %cst_35 = arith.constant 1.000000e+00 : f32
    %69 = vector.broadcast %cst_35 : f32 to vector<2x32xf32>
    %70 = arith.addf %69, %68 : vector<2x32xf32>
    %71 = arith.divf %69, %70 : vector<2x32xf32>
    %72 = vector.extract_strided_slice %59 {offsets = [0, 64], sizes = [2, 32], strides = [1, 1]} : vector<2x128xf32> to vector<2x32xf32>
    %73 = math.tanh %72 : vector<2x32xf32>
    %74 = vector.extract_strided_slice %59 {offsets = [0, 96], sizes = [2, 32], strides = [1, 1]} : vector<2x128xf32> to vector<2x32xf32>
    %75 = arith.negf %74 : vector<2x32xf32>
    %76 = math.exp %75 : vector<2x32xf32>
    %cst_36 = arith.constant 1.000000e+00 : f32
    %77 = vector.broadcast %cst_36 : f32 to vector<2x32xf32>
    %78 = arith.addf %77, %76 : vector<2x32xf32>
    %79 = arith.divf %77, %78 : vector<2x32xf32>
    %80 = arith.mulf %71, %47 : vector<2x32xf32>
    %81 = arith.mulf %65, %73 : vector<2x32xf32>
    %82 = arith.addf %80, %81 : vector<2x32xf32>
    %83 = math.tanh %82 : vector<2x32xf32>
    %84 = arith.mulf %79, %83 : vector<2x32xf32>
    %85 = vector.extract_strided_slice %84 {offsets = [0, 0], sizes = [1, 32], strides = [1, 1]} : vector<2x32xf32> to vector<1x32xf32>
    %c1 = arith.constant 1 : index
    %c0_37 = arith.constant 0 : index
    %86 = vector.load %arg13[%c1, %c0_37] : memref<18x32xf32, #tpu.memory_space<vmem>>, vector<1x32xf32>
    tpu.vector_store %arg13[%c1, %c0_37], %85 {strides = array<i32>} : memref<18x32xf32, #tpu.memory_space<vmem>>, vector<1x32xf32>,
    %87 = vector.extract_strided_slice %84 {offsets = [1, 0], sizes = [1, 32], strides = [1, 1]} : vector<2x32xf32> to vector<1x32xf32>
    %c10 = arith.constant 10 : index
    %c0_38 = arith.constant 0 : index
    %88 = vector.load %arg13[%c10, %c0_38] : memref<18x32xf32, #tpu.memory_space<vmem>>, vector<1x32xf32>
    tpu.vector_store %arg13[%c10, %c0_38], %87 {strides = array<i32>} : memref<18x32xf32, #tpu.memory_space<vmem>>, vector<1x32xf32>,
    %c1_39 = arith.constant 1 : index
    %c0_40 = arith.constant 0 : index
    %c0_41 = arith.constant 0 : index
    %89 = vector.load %arg6[%c1_39, %c0_40, %c0_41] : memref<8x2x32xf32, #tpu.memory_space<vmem>>, vector<1x2x32xf32>
    %90 = vector.shape_cast %89 : vector<1x2x32xf32> to vector<2x32xf32>
    %cst_42 = arith.constant dense<0.000000e+00> : vector<2x128xf32>
    %91 = tpu.matmul %90, %15, %cst_42 {dimension_numbers = #tpu.dot_dimension_numbers<[1], [0], [0], [1], [0, 0, 1, 1], [], []>} : vector<2x32xf32>, vector<32x128xf32>, vector<2x128xf32> -> vector<2x128xf32>
    %cst_43 = arith.constant dense<0.000000e+00> : vector<2x128xf32>
    %92 = tpu.matmul %84, %16, %cst_43 {dimension_numbers = #tpu.dot_dimension_numbers<[1], [0], [0], [1], [0, 0, 1, 1], [], []>} : vector<2x32xf32>, vector<32x128xf32>, vector<2x128xf32> -> vector<2x128xf32>
    %93 = arith.addf %91, %92 : vector<2x128xf32>
    %94 = arith.addf %93, %19 : vector<2x128xf32>
    %95 = vector.extract_strided_slice %94 {offsets = [0, 0], sizes = [2, 32], strides = [1, 1]} : vector<2x128xf32> to vector<2x32xf32>
    %96 = arith.negf %95 : vector<2x32xf32>
    %97 = math.exp %96 : vector<2x32xf32>
    %cst_44 = arith.constant 1.000000e+00 : f32
    %98 = vector.broadcast %cst_44 : f32 to vector<2x32xf32>
    %99 = arith.addf %98, %97 : vector<2x32xf32>
    %100 = arith.divf %98, %99 : vector<2x32xf32>
    %101 = vector.extract_strided_slice %94 {offsets = [0, 32], sizes = [2, 32], strides = [1, 1]} : vector<2x128xf32> to vector<2x32xf32>
    %102 = arith.negf %101 : vector<2x32xf32>
    %103 = math.exp %102 : vector<2x32xf32>
    %cst_45 = arith.constant 1.000000e+00 : f32
    %104 = vector.broadcast %cst_45 : f32 to vector<2x32xf32>
    %105 = arith.addf %104, %103 : vector<2x32xf32>
    %106 = arith.divf %104, %105 : vector<2x32xf32>
    %107 = vector.extract_strided_slice %94 {offsets = [0, 64], sizes = [2, 32], strides = [1, 1]} : vector<2x128xf32> to vector<2x32xf32>
    %108 = math.tanh %107 : vector<2x32xf32>
    %109 = vector.extract_strided_slice %94 {offsets = [0, 96], sizes = [2, 32], strides = [1, 1]} : vector<2x128xf32> to vector<2x32xf32>
    %110 = arith.negf %109 : vector<2x32xf32>
    %111 = math.exp %110 : vector<2x32xf32>
    %cst_46 = arith.constant 1.000000e+00 : f32
    %112 = vector.broadcast %cst_46 : f32 to vector<2x32xf32>
    %113 = arith.addf %112, %111 : vector<2x32xf32>
    %114 = arith.divf %112, %113 : vector<2x32xf32>
    %115 = arith.mulf %106, %82 : vector<2x32xf32>
    %116 = arith.mulf %100, %108 : vector<2x32xf32>
    %117 = arith.addf %115, %116 : vector<2x32xf32>
    %118 = math.tanh %117 : vector<2x32xf32>
    %119 = arith.mulf %114, %118 : vector<2x32xf32>
    %120 = vector.extract_strided_slice %119 {offsets = [0, 0], sizes = [1, 32], strides = [1, 1]} : vector<2x32xf32> to vector<1x32xf32>
    %c2 = arith.constant 2 : index
    %c0_47 = arith.constant 0 : index
    %121 = vector.load %arg13[%c2, %c0_47] : memref<18x32xf32, #tpu.memory_space<vmem>>, vector<1x32xf32>
    tpu.vector_store %arg13[%c2, %c0_47], %120 {strides = array<i32>} : memref<18x32xf32, #tpu.memory_space<vmem>>, vector<1x32xf32>,
    %122 = vector.extract_strided_slice %119 {offsets = [1, 0], sizes = [1, 32], strides = [1, 1]} : vector<2x32xf32> to vector<1x32xf32>
    %c11 = arith.constant 11 : index
    %c0_48 = arith.constant 0 : index
    %123 = vector.load %arg13[%c11, %c0_48] : memref<18x32xf32, #tpu.memory_space<vmem>>, vector<1x32xf32>
    tpu.vector_store %arg13[%c11, %c0_48], %122 {strides = array<i32>} : memref<18x32xf32, #tpu.memory_space<vmem>>, vector<1x32xf32>,
    %c2_49 = arith.constant 2 : index
    %c0_50 = arith.constant 0 : index
    %c0_51 = arith.constant 0 : index
    %124 = vector.load %arg6[%c2_49, %c0_50, %c0_51] : memref<8x2x32xf32, #tpu.memory_space<vmem>>, vector<1x2x32xf32>
    %125 = vector.shape_cast %124 : vector<1x2x32xf32> to vector<2x32xf32>
    %cst_52 = arith.constant dense<0.000000e+00> : vector<2x128xf32>
    %126 = tpu.matmul %125, %15, %cst_52 {dimension_numbers = #tpu.dot_dimension_numbers<[1], [0], [0], [1], [0, 0, 1, 1], [], []>} : vector<2x32xf32>, vector<32x128xf32>, vector<2x128xf32> -> vector<2x128xf32>
    %cst_53 = arith.constant dense<0.000000e+00> : vector<2x128xf32>
    %127 = tpu.matmul %119, %16, %cst_53 {dimension_numbers = #tpu.dot_dimension_numbers<[1], [0], [0], [1], [0, 0, 1, 1], [], []>} : vector<2x32xf32>, vector<32x128xf32>, vector<2x128xf32> -> vector<2x128xf32>
    %128 = arith.addf %126, %127 : vector<2x128xf32>
    %129 = arith.addf %128, %19 : vector<2x128xf32>
    %130 = vector.extract_strided_slice %129 {offsets = [0, 0], sizes = [2, 32], strides = [1, 1]} : vector<2x128xf32> to vector<2x32xf32>
    %131 = arith.negf %130 : vector<2x32xf32>
    %132 = math.exp %131 : vector<2x32xf32>
    %cst_54 = arith.constant 1.000000e+00 : f32
    %133 = vector.broadcast %cst_54 : f32 to vector<2x32xf32>
    %134 = arith.addf %133, %132 : vector<2x32xf32>
    %135 = arith.divf %133, %134 : vector<2x32xf32>
    %136 = vector.extract_strided_slice %129 {offsets = [0, 32], sizes = [2, 32], strides = [1, 1]} : vector<2x128xf32> to vector<2x32xf32>
    %137 = arith.negf %136 : vector<2x32xf32>
    %138 = math.exp %137 : vector<2x32xf32>
    %cst_55 = arith.constant 1.000000e+00 : f32
    %139 = vector.broadcast %cst_55 : f32 to vector<2x32xf32>
    %140 = arith.addf %139, %138 : vector<2x32xf32>
    %141 = arith.divf %139, %140 : vector<2x32xf32>
    %142 = vector.extract_strided_slice %129 {offsets = [0, 64], sizes = [2, 32], strides = [1, 1]} : vector<2x128xf32> to vector<2x32xf32>
    %143 = math.tanh %142 : vector<2x32xf32>
    %144 = vector.extract_strided_slice %129 {offsets = [0, 96], sizes = [2, 32], strides = [1, 1]} : vector<2x128xf32> to vector<2x32xf32>
    %145 = arith.negf %144 : vector<2x32xf32>
    %146 = math.exp %145 : vector<2x32xf32>
    %cst_56 = arith.constant 1.000000e+00 : f32
    %147 = vector.broadcast %cst_56 : f32 to vector<2x32xf32>
    %148 = arith.addf %147, %146 : vector<2x32xf32>
    %149 = arith.divf %147, %148 : vector<2x32xf32>
    %150 = arith.mulf %141, %117 : vector<2x32xf32>
    %151 = arith.mulf %135, %143 : vector<2x32xf32>
    %152 = arith.addf %150, %151 : vector<2x32xf32>
    %153 = math.tanh %152 : vector<2x32xf32>
    %154 = arith.mulf %149, %153 : vector<2x32xf32>
    %155 = vector.extract_strided_slice %154 {offsets = [0, 0], sizes = [1, 32], strides = [1, 1]} : vector<2x32xf32> to vector<1x32xf32>
    %c3 = arith.constant 3 : index
    %c0_57 = arith.constant 0 : index
    %156 = vector.load %arg13[%c3, %c0_57] : memref<18x32xf32, #tpu.memory_space<vmem>>, vector<1x32xf32>
    tpu.vector_store %arg13[%c3, %c0_57], %155 {strides = array<i32>} : memref<18x32xf32, #tpu.memory_space<vmem>>, vector<1x32xf32>,
    %157 = vector.extract_strided_slice %154 {offsets = [1, 0], sizes = [1, 32], strides = [1, 1]} : vector<2x32xf32> to vector<1x32xf32>
    %c12 = arith.constant 12 : index
    %c0_58 = arith.constant 0 : index
    %158 = vector.load %arg13[%c12, %c0_58] : memref<18x32xf32, #tpu.memory_space<vmem>>, vector<1x32xf32>
    tpu.vector_store %arg13[%c12, %c0_58], %157 {strides = array<i32>} : memref<18x32xf32, #tpu.memory_space<vmem>>, vector<1x32xf32>,
    %c3_59 = arith.constant 3 : index
    %c0_60 = arith.constant 0 : index
    %c0_61 = arith.constant 0 : index
    %159 = vector.load %arg6[%c3_59, %c0_60, %c0_61] : memref<8x2x32xf32, #tpu.memory_space<vmem>>, vector<1x2x32xf32>
    %160 = vector.shape_cast %159 : vector<1x2x32xf32> to vector<2x32xf32>
    %cst_62 = arith.constant dense<0.000000e+00> : vector<2x128xf32>
    %161 = tpu.matmul %160, %15, %cst_62 {dimension_numbers = #tpu.dot_dimension_numbers<[1], [0], [0], [1], [0, 0, 1, 1], [], []>} : vector<2x32xf32>, vector<32x128xf32>, vector<2x128xf32> -> vector<2x128xf32>
    %cst_63 = arith.constant dense<0.000000e+00> : vector<2x128xf32>
    %162 = tpu.matmul %154, %16, %cst_63 {dimension_numbers = #tpu.dot_dimension_numbers<[1], [0], [0], [1], [0, 0, 1, 1], [], []>} : vector<2x32xf32>, vector<32x128xf32>, vector<2x128xf32> -> vector<2x128xf32>
    %163 = arith.addf %161, %162 : vector<2x128xf32>
    %164 = arith.addf %163, %19 : vector<2x128xf32>
    %165 = vector.extract_strided_slice %164 {offsets = [0, 0], sizes = [2, 32], strides = [1, 1]} : vector<2x128xf32> to vector<2x32xf32>
    %166 = arith.negf %165 : vector<2x32xf32>
    %167 = math.exp %166 : vector<2x32xf32>
    %cst_64 = arith.constant 1.000000e+00 : f32
    %168 = vector.broadcast %cst_64 : f32 to vector<2x32xf32>
    %169 = arith.addf %168, %167 : vector<2x32xf32>
    %170 = arith.divf %168, %169 : vector<2x32xf32>
    %171 = vector.extract_strided_slice %164 {offsets = [0, 32], sizes = [2, 32], strides = [1, 1]} : vector<2x128xf32> to vector<2x32xf32>
    %172 = arith.negf %171 : vector<2x32xf32>
    %173 = math.exp %172 : vector<2x32xf32>
    %cst_65 = arith.constant 1.000000e+00 : f32
    %174 = vector.broadcast %cst_65 : f32 to vector<2x32xf32>
    %175 = arith.addf %174, %173 : vector<2x32xf32>
    %176 = arith.divf %174, %175 : vector<2x32xf32>
    %177 = vector.extract_strided_slice %164 {offsets = [0, 64], sizes = [2, 32], strides = [1, 1]} : vector<2x128xf32> to vector<2x32xf32>
    %178 = math.tanh %177 : vector<2x32xf32>
    %179 = vector.extract_strided_slice %164 {offsets = [0, 96], sizes = [2, 32], strides = [1, 1]} : vector<2x128xf32> to vector<2x32xf32>
    %180 = arith.negf %179 : vector<2x32xf32>
    %181 = math.exp %180 : vector<2x32xf32>
    %cst_66 = arith.constant 1.000000e+00 : f32
    %182 = vector.broadcast %cst_66 : f32 to vector<2x32xf32>
    %183 = arith.addf %182, %181 : vector<2x32xf32>
    %184 = arith.divf %182, %183 : vector<2x32xf32>
    %185 = arith.mulf %176, %152 : vector<2x32xf32>
    %186 = arith.mulf %170, %178 : vector<2x32xf32>
    %187 = arith.addf %185, %186 : vector<2x32xf32>
    %188 = math.tanh %187 : vector<2x32xf32>
    %189 = arith.mulf %184, %188 : vector<2x32xf32>
    %190 = vector.extract_strided_slice %189 {offsets = [0, 0], sizes = [1, 32], strides = [1, 1]} : vector<2x32xf32> to vector<1x32xf32>
    %c4 = arith.constant 4 : index
    %c0_67 = arith.constant 0 : index
    %191 = vector.load %arg13[%c4, %c0_67] : memref<18x32xf32, #tpu.memory_space<vmem>>, vector<1x32xf32>
    tpu.vector_store %arg13[%c4, %c0_67], %190 {strides = array<i32>} : memref<18x32xf32, #tpu.memory_space<vmem>>, vector<1x32xf32>,
    %192 = vector.extract_strided_slice %189 {offsets = [1, 0], sizes = [1, 32], strides = [1, 1]} : vector<2x32xf32> to vector<1x32xf32>
    %c13 = arith.constant 13 : index
    %c0_68 = arith.constant 0 : index
    %193 = vector.load %arg13[%c13, %c0_68] : memref<18x32xf32, #tpu.memory_space<vmem>>, vector<1x32xf32>
    tpu.vector_store %arg13[%c13, %c0_68], %192 {strides = array<i32>} : memref<18x32xf32, #tpu.memory_space<vmem>>, vector<1x32xf32>,
    %c4_69 = arith.constant 4 : index
    %c0_70 = arith.constant 0 : index
    %c0_71 = arith.constant 0 : index
    %194 = vector.load %arg6[%c4_69, %c0_70, %c0_71] : memref<8x2x32xf32, #tpu.memory_space<vmem>>, vector<1x2x32xf32>
    %195 = vector.shape_cast %194 : vector<1x2x32xf32> to vector<2x32xf32>
    %cst_72 = arith.constant dense<0.000000e+00> : vector<2x128xf32>
    %196 = tpu.matmul %195, %15, %cst_72 {dimension_numbers = #tpu.dot_dimension_numbers<[1], [0], [0], [1], [0, 0, 1, 1], [], []>} : vector<2x32xf32>, vector<32x128xf32>, vector<2x128xf32> -> vector<2x128xf32>
    %cst_73 = arith.constant dense<0.000000e+00> : vector<2x128xf32>
    %197 = tpu.matmul %189, %16, %cst_73 {dimension_numbers = #tpu.dot_dimension_numbers<[1], [0], [0], [1], [0, 0, 1, 1], [], []>} : vector<2x32xf32>, vector<32x128xf32>, vector<2x128xf32> -> vector<2x128xf32>
    %198 = arith.addf %196, %197 : vector<2x128xf32>
    %199 = arith.addf %198, %19 : vector<2x128xf32>
    %200 = vector.extract_strided_slice %199 {offsets = [0, 0], sizes = [2, 32], strides = [1, 1]} : vector<2x128xf32> to vector<2x32xf32>
    %201 = arith.negf %200 : vector<2x32xf32>
    %202 = math.exp %201 : vector<2x32xf32>
    %cst_74 = arith.constant 1.000000e+00 : f32
    %203 = vector.broadcast %cst_74 : f32 to vector<2x32xf32>
    %204 = arith.addf %203, %202 : vector<2x32xf32>
    %205 = arith.divf %203, %204 : vector<2x32xf32>
    %206 = vector.extract_strided_slice %199 {offsets = [0, 32], sizes = [2, 32], strides = [1, 1]} : vector<2x128xf32> to vector<2x32xf32>
    %207 = arith.negf %206 : vector<2x32xf32>
    %208 = math.exp %207 : vector<2x32xf32>
    %cst_75 = arith.constant 1.000000e+00 : f32
    %209 = vector.broadcast %cst_75 : f32 to vector<2x32xf32>
    %210 = arith.addf %209, %208 : vector<2x32xf32>
    %211 = arith.divf %209, %210 : vector<2x32xf32>
    %212 = vector.extract_strided_slice %199 {offsets = [0, 64], sizes = [2, 32], strides = [1, 1]} : vector<2x128xf32> to vector<2x32xf32>
    %213 = math.tanh %212 : vector<2x32xf32>
    %214 = vector.extract_strided_slice %199 {offsets = [0, 96], sizes = [2, 32], strides = [1, 1]} : vector<2x128xf32> to vector<2x32xf32>
    %215 = arith.negf %214 : vector<2x32xf32>
    %216 = math.exp %215 : vector<2x32xf32>
    %cst_76 = arith.constant 1.000000e+00 : f32
    %217 = vector.broadcast %cst_76 : f32 to vector<2x32xf32>
    %218 = arith.addf %217, %216 : vector<2x32xf32>
    %219 = arith.divf %217, %218 : vector<2x32xf32>
    %220 = arith.mulf %211, %187 : vector<2x32xf32>
    %221 = arith.mulf %205, %213 : vector<2x32xf32>
    %222 = arith.addf %220, %221 : vector<2x32xf32>
    %223 = math.tanh %222 : vector<2x32xf32>
    %224 = arith.mulf %219, %223 : vector<2x32xf32>
    %225 = vector.extract_strided_slice %224 {offsets = [0, 0], sizes = [1, 32], strides = [1, 1]} : vector<2x32xf32> to vector<1x32xf32>
    %c5 = arith.constant 5 : index
    %c0_77 = arith.constant 0 : index
    %226 = vector.load %arg13[%c5, %c0_77] : memref<18x32xf32, #tpu.memory_space<vmem>>, vector<1x32xf32>
    tpu.vector_store %arg13[%c5, %c0_77], %225 {strides = array<i32>} : memref<18x32xf32, #tpu.memory_space<vmem>>, vector<1x32xf32>,
    %227 = vector.extract_strided_slice %224 {offsets = [1, 0], sizes = [1, 32], strides = [1, 1]} : vector<2x32xf32> to vector<1x32xf32>
    %c14 = arith.constant 14 : index
    %c0_78 = arith.constant 0 : index
    %228 = vector.load %arg13[%c14, %c0_78] : memref<18x32xf32, #tpu.memory_space<vmem>>, vector<1x32xf32>
    tpu.vector_store %arg13[%c14, %c0_78], %227 {strides = array<i32>} : memref<18x32xf32, #tpu.memory_space<vmem>>, vector<1x32xf32>,
    %c5_79 = arith.constant 5 : index
    %c0_80 = arith.constant 0 : index
    %c0_81 = arith.constant 0 : index
    %229 = vector.load %arg6[%c5_79, %c0_80, %c0_81] : memref<8x2x32xf32, #tpu.memory_space<vmem>>, vector<1x2x32xf32>
    %230 = vector.shape_cast %229 : vector<1x2x32xf32> to vector<2x32xf32>
    %cst_82 = arith.constant dense<0.000000e+00> : vector<2x128xf32>
    %231 = tpu.matmul %230, %15, %cst_82 {dimension_numbers = #tpu.dot_dimension_numbers<[1], [0], [0], [1], [0, 0, 1, 1], [], []>} : vector<2x32xf32>, vector<32x128xf32>, vector<2x128xf32> -> vector<2x128xf32>
    %cst_83 = arith.constant dense<0.000000e+00> : vector<2x128xf32>
    %232 = tpu.matmul %224, %16, %cst_83 {dimension_numbers = #tpu.dot_dimension_numbers<[1], [0], [0], [1], [0, 0, 1, 1], [], []>} : vector<2x32xf32>, vector<32x128xf32>, vector<2x128xf32> -> vector<2x128xf32>
    %233 = arith.addf %231, %232 : vector<2x128xf32>
    %234 = arith.addf %233, %19 : vector<2x128xf32>
    %235 = vector.extract_strided_slice %234 {offsets = [0, 0], sizes = [2, 32], strides = [1, 1]} : vector<2x128xf32> to vector<2x32xf32>
    %236 = arith.negf %235 : vector<2x32xf32>
    %237 = math.exp %236 : vector<2x32xf32>
    %cst_84 = arith.constant 1.000000e+00 : f32
    %238 = vector.broadcast %cst_84 : f32 to vector<2x32xf32>
    %239 = arith.addf %238, %237 : vector<2x32xf32>
    %240 = arith.divf %238, %239 : vector<2x32xf32>
    %241 = vector.extract_strided_slice %234 {offsets = [0, 32], sizes = [2, 32], strides = [1, 1]} : vector<2x128xf32> to vector<2x32xf32>
    %242 = arith.negf %241 : vector<2x32xf32>
    %243 = math.exp %242 : vector<2x32xf32>
    %cst_85 = arith.constant 1.000000e+00 : f32
    %244 = vector.broadcast %cst_85 : f32 to vector<2x32xf32>
    %245 = arith.addf %244, %243 : vector<2x32xf32>
    %246 = arith.divf %244, %245 : vector<2x32xf32>
    %247 = vector.extract_strided_slice %234 {offsets = [0, 64], sizes = [2, 32], strides = [1, 1]} : vector<2x128xf32> to vector<2x32xf32>
    %248 = math.tanh %247 : vector<2x32xf32>
    %249 = vector.extract_strided_slice %234 {offsets = [0, 96], sizes = [2, 32], strides = [1, 1]} : vector<2x128xf32> to vector<2x32xf32>
    %250 = arith.negf %249 : vector<2x32xf32>
    %251 = math.exp %250 : vector<2x32xf32>
    %cst_86 = arith.constant 1.000000e+00 : f32
    %252 = vector.broadcast %cst_86 : f32 to vector<2x32xf32>
    %253 = arith.addf %252, %251 : vector<2x32xf32>
    %254 = arith.divf %252, %253 : vector<2x32xf32>
    %255 = arith.mulf %246, %222 : vector<2x32xf32>
    %256 = arith.mulf %240, %248 : vector<2x32xf32>
    %257 = arith.addf %255, %256 : vector<2x32xf32>
    %258 = math.tanh %257 : vector<2x32xf32>
    %259 = arith.mulf %254, %258 : vector<2x32xf32>
    %260 = vector.extract_strided_slice %259 {offsets = [0, 0], sizes = [1, 32], strides = [1, 1]} : vector<2x32xf32> to vector<1x32xf32>
    %c6 = arith.constant 6 : index
    %c0_87 = arith.constant 0 : index
    %261 = vector.load %arg13[%c6, %c0_87] : memref<18x32xf32, #tpu.memory_space<vmem>>, vector<1x32xf32>
    tpu.vector_store %arg13[%c6, %c0_87], %260 {strides = array<i32>} : memref<18x32xf32, #tpu.memory_space<vmem>>, vector<1x32xf32>,
    %262 = vector.extract_strided_slice %259 {offsets = [1, 0], sizes = [1, 32], strides = [1, 1]} : vector<2x32xf32> to vector<1x32xf32>
    %c15 = arith.constant 15 : index
    %c0_88 = arith.constant 0 : index
    %263 = vector.load %arg13[%c15, %c0_88] : memref<18x32xf32, #tpu.memory_space<vmem>>, vector<1x32xf32>
    tpu.vector_store %arg13[%c15, %c0_88], %262 {strides = array<i32>} : memref<18x32xf32, #tpu.memory_space<vmem>>, vector<1x32xf32>,
    %c6_89 = arith.constant 6 : index
    %c0_90 = arith.constant 0 : index
    %c0_91 = arith.constant 0 : index
    %264 = vector.load %arg6[%c6_89, %c0_90, %c0_91] : memref<8x2x32xf32, #tpu.memory_space<vmem>>, vector<1x2x32xf32>
    %265 = vector.shape_cast %264 : vector<1x2x32xf32> to vector<2x32xf32>
    %cst_92 = arith.constant dense<0.000000e+00> : vector<2x128xf32>
    %266 = tpu.matmul %265, %15, %cst_92 {dimension_numbers = #tpu.dot_dimension_numbers<[1], [0], [0], [1], [0, 0, 1, 1], [], []>} : vector<2x32xf32>, vector<32x128xf32>, vector<2x128xf32> -> vector<2x128xf32>
    %cst_93 = arith.constant dense<0.000000e+00> : vector<2x128xf32>
    %267 = tpu.matmul %259, %16, %cst_93 {dimension_numbers = #tpu.dot_dimension_numbers<[1], [0], [0], [1], [0, 0, 1, 1], [], []>} : vector<2x32xf32>, vector<32x128xf32>, vector<2x128xf32> -> vector<2x128xf32>
    %268 = arith.addf %266, %267 : vector<2x128xf32>
    %269 = arith.addf %268, %19 : vector<2x128xf32>
    %270 = vector.extract_strided_slice %269 {offsets = [0, 0], sizes = [2, 32], strides = [1, 1]} : vector<2x128xf32> to vector<2x32xf32>
    %271 = arith.negf %270 : vector<2x32xf32>
    %272 = math.exp %271 : vector<2x32xf32>
    %cst_94 = arith.constant 1.000000e+00 : f32
    %273 = vector.broadcast %cst_94 : f32 to vector<2x32xf32>
    %274 = arith.addf %273, %272 : vector<2x32xf32>
    %275 = arith.divf %273, %274 : vector<2x32xf32>
    %276 = vector.extract_strided_slice %269 {offsets = [0, 32], sizes = [2, 32], strides = [1, 1]} : vector<2x128xf32> to vector<2x32xf32>
    %277 = arith.negf %276 : vector<2x32xf32>
    %278 = math.exp %277 : vector<2x32xf32>
    %cst_95 = arith.constant 1.000000e+00 : f32
    %279 = vector.broadcast %cst_95 : f32 to vector<2x32xf32>
    %280 = arith.addf %279, %278 : vector<2x32xf32>
    %281 = arith.divf %279, %280 : vector<2x32xf32>
    %282 = vector.extract_strided_slice %269 {offsets = [0, 64], sizes = [2, 32], strides = [1, 1]} : vector<2x128xf32> to vector<2x32xf32>
    %283 = math.tanh %282 : vector<2x32xf32>
    %284 = vector.extract_strided_slice %269 {offsets = [0, 96], sizes = [2, 32], strides = [1, 1]} : vector<2x128xf32> to vector<2x32xf32>
    %285 = arith.negf %284 : vector<2x32xf32>
    %286 = math.exp %285 : vector<2x32xf32>
    %cst_96 = arith.constant 1.000000e+00 : f32
    %287 = vector.broadcast %cst_96 : f32 to vector<2x32xf32>
    %288 = arith.addf %287, %286 : vector<2x32xf32>
    %289 = arith.divf %287, %288 : vector<2x32xf32>
    %290 = arith.mulf %281, %257 : vector<2x32xf32>
    %291 = arith.mulf %275, %283 : vector<2x32xf32>
    %292 = arith.addf %290, %291 : vector<2x32xf32>
    %293 = math.tanh %292 : vector<2x32xf32>
    %294 = arith.mulf %289, %293 : vector<2x32xf32>
    %295 = vector.extract_strided_slice %294 {offsets = [0, 0], sizes = [1, 32], strides = [1, 1]} : vector<2x32xf32> to vector<1x32xf32>
    %c7 = arith.constant 7 : index
    %c0_97 = arith.constant 0 : index
    %296 = vector.load %arg13[%c7, %c0_97] : memref<18x32xf32, #tpu.memory_space<vmem>>, vector<1x32xf32>
    tpu.vector_store %arg13[%c7, %c0_97], %295 {strides = array<i32>} : memref<18x32xf32, #tpu.memory_space<vmem>>, vector<1x32xf32>,
    %297 = vector.extract_strided_slice %294 {offsets = [1, 0], sizes = [1, 32], strides = [1, 1]} : vector<2x32xf32> to vector<1x32xf32>
    %c16 = arith.constant 16 : index
    %c0_98 = arith.constant 0 : index
    %298 = vector.load %arg13[%c16, %c0_98] : memref<18x32xf32, #tpu.memory_space<vmem>>, vector<1x32xf32>
    tpu.vector_store %arg13[%c16, %c0_98], %297 {strides = array<i32>} : memref<18x32xf32, #tpu.memory_space<vmem>>, vector<1x32xf32>,
    %c7_99 = arith.constant 7 : index
    %c0_100 = arith.constant 0 : index
    %c0_101 = arith.constant 0 : index
    %299 = vector.load %arg6[%c7_99, %c0_100, %c0_101] : memref<8x2x32xf32, #tpu.memory_space<vmem>>, vector<1x2x32xf32>
    %300 = vector.shape_cast %299 : vector<1x2x32xf32> to vector<2x32xf32>
    %cst_102 = arith.constant dense<0.000000e+00> : vector<2x128xf32>
    %301 = tpu.matmul %300, %15, %cst_102 {dimension_numbers = #tpu.dot_dimension_numbers<[1], [0], [0], [1], [0, 0, 1, 1], [], []>} : vector<2x32xf32>, vector<32x128xf32>, vector<2x128xf32> -> vector<2x128xf32>
    %cst_103 = arith.constant dense<0.000000e+00> : vector<2x128xf32>
    %302 = tpu.matmul %294, %16, %cst_103 {dimension_numbers = #tpu.dot_dimension_numbers<[1], [0], [0], [1], [0, 0, 1, 1], [], []>} : vector<2x32xf32>, vector<32x128xf32>, vector<2x128xf32> -> vector<2x128xf32>
    %303 = arith.addf %301, %302 : vector<2x128xf32>
    %304 = arith.addf %303, %19 : vector<2x128xf32>
    %305 = vector.extract_strided_slice %304 {offsets = [0, 0], sizes = [2, 32], strides = [1, 1]} : vector<2x128xf32> to vector<2x32xf32>
    %306 = arith.negf %305 : vector<2x32xf32>
    %307 = math.exp %306 : vector<2x32xf32>
    %cst_104 = arith.constant 1.000000e+00 : f32
    %308 = vector.broadcast %cst_104 : f32 to vector<2x32xf32>
    %309 = arith.addf %308, %307 : vector<2x32xf32>
    %310 = arith.divf %308, %309 : vector<2x32xf32>
    %311 = vector.extract_strided_slice %304 {offsets = [0, 32], sizes = [2, 32], strides = [1, 1]} : vector<2x128xf32> to vector<2x32xf32>
    %312 = arith.negf %311 : vector<2x32xf32>
    %313 = math.exp %312 : vector<2x32xf32>
    %cst_105 = arith.constant 1.000000e+00 : f32
    %314 = vector.broadcast %cst_105 : f32 to vector<2x32xf32>
    %315 = arith.addf %314, %313 : vector<2x32xf32>
    %316 = arith.divf %314, %315 : vector<2x32xf32>
    %317 = vector.extract_strided_slice %304 {offsets = [0, 64], sizes = [2, 32], strides = [1, 1]} : vector<2x128xf32> to vector<2x32xf32>
    %318 = math.tanh %317 : vector<2x32xf32>
    %319 = vector.extract_strided_slice %304 {offsets = [0, 96], sizes = [2, 32], strides = [1, 1]} : vector<2x128xf32> to vector<2x32xf32>
    %320 = arith.negf %319 : vector<2x32xf32>
    %321 = math.exp %320 : vector<2x32xf32>
    %cst_106 = arith.constant 1.000000e+00 : f32
    %322 = vector.broadcast %cst_106 : f32 to vector<2x32xf32>
    %323 = arith.addf %322, %321 : vector<2x32xf32>
    %324 = arith.divf %322, %323 : vector<2x32xf32>
    %325 = arith.mulf %316, %292 : vector<2x32xf32>
    %326 = arith.mulf %310, %318 : vector<2x32xf32>
    %327 = arith.addf %325, %326 : vector<2x32xf32>
    %328 = math.tanh %327 : vector<2x32xf32>
    %329 = arith.mulf %324, %328 : vector<2x32xf32>
    %330 = vector.extract_strided_slice %329 {offsets = [0, 0], sizes = [1, 32], strides = [1, 1]} : vector<2x32xf32> to vector<1x32xf32>
    %c8 = arith.constant 8 : index
    %c0_107 = arith.constant 0 : index
    %331 = vector.load %arg13[%c8, %c0_107] : memref<18x32xf32, #tpu.memory_space<vmem>>, vector<1x32xf32>
    tpu.vector_store %arg13[%c8, %c0_107], %330 {strides = array<i32>} : memref<18x32xf32, #tpu.memory_space<vmem>>, vector<1x32xf32>,
    %332 = vector.extract_strided_slice %329 {offsets = [1, 0], sizes = [1, 32], strides = [1, 1]} : vector<2x32xf32> to vector<1x32xf32>
    %c17 = arith.constant 17 : index
    %c0_108 = arith.constant 0 : index
    %333 = vector.load %arg13[%c17, %c0_108] : memref<18x32xf32, #tpu.memory_space<vmem>>, vector<1x32xf32>
    tpu.vector_store %arg13[%c17, %c0_108], %332 {strides = array<i32>} : memref<18x32xf32, #tpu.memory_space<vmem>>, vector<1x32xf32>,
    %c0_109 = arith.constant 0 : index
    %c0_110 = arith.constant 0 : index
    %334 = vector.load %arg13[%c0_109, %c0_110] : memref<18x32xf32, #tpu.memory_space<vmem>>, vector<18x32xf32>
    %c0_111 = arith.constant 0 : index
    %c0_112 = arith.constant 0 : index
    %335 = vector.load %arg10[%c0_111, %c0_112] : memref<32x32xf32, #tpu.memory_space<vmem>>, vector<32x32xf32>
    %cst_113 = arith.constant dense<0.000000e+00> : vector<18x32xf32>
    %336 = tpu.matmul %334, %335, %cst_113 {dimension_numbers = #tpu.dot_dimension_numbers<[1], [0], [0], [1], [0, 0, 1, 1], [], []>} : vector<18x32xf32>, vector<32x32xf32>, vector<18x32xf32> -> vector<18x32xf32>
    %c0_114 = arith.constant 0 : index
    %c0_115 = arith.constant 0 : index
    %337 = vector.load %arg11[%c0_114, %c0_115] : memref<1x32xf32, #tpu.memory_space<vmem>>, vector<1x32xf32>
    %338 = vector.broadcast %337 : vector<1x32xf32> to vector<18x32xf32>
    %339 = arith.addf %336, %338 : vector<18x32xf32>
    %c0_116 = arith.constant 0 : index
    %c0_117 = arith.constant 0 : index
    %340 = vector.load %arg12[%c0_116, %c0_117] : memref<18x32xf32, #tpu.memory_space<vmem>>, vector<18x32xf32>
    tpu.vector_store %arg12[%c0_116, %c0_117], %339 {strides = array<i32>} : memref<18x32xf32, #tpu.memory_space<vmem>>, vector<18x32xf32>,
    return
  }
}

</mosaic_0001>

<bundles_post_ra>
// kernel: image_caption_forward.1
= control target key start
LH: loop header
LB: loop body
LE: loop exit
PB: predicated region body
PF: predicated region fallthrough
CT: control target
= control target key end

     0   :  { %vm309_vm0 = vcmask 1042432   ;;  %vm116_vm1 = vcmask 220160   ;;  %vm3483_vm2 = vmmov 0   ;;  %vm933_vm3 = vcmask 64512   ;;  %s3484_s24 = smov 64   ;;  %s4375_s2 = inlined_call_operand.vmem [shape: f32[27,8], index: 2, kind: input, shape index: {}]   ;;  %s4376_s0 = inlined_call_operand.vmem [shape: f32[512,27], index: 0, kind: input, shape index: {}]   ;;  %s4377_s1 = inlined_call_operand.vmem [shape: f32[2,512], index: 1, kind: input, shape index: {}]   ;;  %s4378_s3 = inlined_call_operand.vmem [shape: f32[1,8], index: 3, kind: input, shape index: {}]   ;;  %s4379_s4 = inlined_call_operand.vmem [shape: f32[8,32], index: 4, kind: input, shape index: {}]   ;;  %s4380_s8 = inlined_call_operand.vmem [shape: f32[32,128], index: 8, kind: input, shape index: {}]   ;;  %s4381_s7 = inlined_call_operand.vmem [shape: f32[32,128], index: 7, kind: input, shape index: {}]   ;;  %s4382_s5 = inlined_call_operand.vmem [shape: f32[1,32], index: 5, kind: input, shape index: {}]   ;;  %s4383_s9 = inlined_call_operand.vmem [shape: f32[1,128], index: 9, kind: input, shape index: {}]   ;;  %s4384_s6 = inlined_call_operand.vmem [shape: f32[8,2,32], index: 6, kind: input, shape index: {}]   ;;  %s4385_s10 = inlined_call_operand.vmem [shape: f32[32,32], index: 10, kind: input, shape index: {}]   ;;  %s4386_s11 = inlined_call_operand.vmem [shape: f32[1,32], index: 11, kind: input, shape index: {}]   ;;  %s4387_s12 = inlined_call_operand.vmem [shape: f32[18,32], index: 12, kind: output, shape index: {}]  }
   0x1   :  { %v108_v0 = vld [vmem:[%s4375_s2 + $0x18] sm:$0x7]  ;;  %v107_v1 = vld [vmem:[%s4375_s2 + $0x10] sm:$0xff]  ;;  %v41_v2 = vld [vmem:[%s4376_s0] sm:$0xff]  ;;  %vm1022_vm4 = vcmask 261120   ;;  %vm1198_vm5 = vcmask 253952  }
   0x2   :  { %3079 = vmatprep.subr.msk.mxu0 %vm309_vm0, %v108_v0  ;;  %v106_v3 = vld [vmem:[%s4375_s2 + $0x8] sm:$0xff]  ;;  %3087 = vmatprep.mubr.msk.f32.mxu0 %vm116_vm1, %v41_v2  ;;  %v105_v4 = vld [vmem:[%s4375_s2] sm:$0xff]  ;;  %v43_v6 = vld [vmem:[%s4376_s0 + $0x10] sm:$0xff]  ;;  %vm1200_vm6 = vcmask 254977   ;;  %vm2730_vm7 = vcmask 254976  }
   0x3   :  { %3080 = vmatpush3.msk.msra.mxu0 %vm309_vm0, %v108_v0  ;;  %v42_v5 = vld [vmem:[%s4376_s0 + $0x8] sm:$0xff]  ;;  %v44_v7 = vld [vmem:[%s4376_s0 + $0x18] sm:$0xff]  ;;  %v45_v8 = vld [vmem:[%s4376_s0 + $0x20] sm:$0xff] }
   0x4   :  { %3081 = vmatprep.subr.mxu0 %v107_v1  ;;  %v46_v9 = vld [vmem:[%s4376_s0 + $0x28] sm:$0xff]  ;;  %v47_v10 = vld [vmem:[%s4376_s0 + $0x30] sm:$0xff]  ;;  %v48_v11 = vld [vmem:[%s4376_s0 + $0x38] sm:$0xff] }
   0x5   :  { %3082 = vmatpush3.msra.mxu0 %v107_v1  ;;  %v49_v12 = vld [vmem:[%s4376_s0 + $0x40] sm:$0xff]  ;;  %v50_v13 = vld [vmem:[%s4376_s0 + $0x48] sm:$0xff]  ;;  %v51_v14 = vld [vmem:[%s4376_s0 + $0x50] sm:$0xff] }
   0x6   :  { %3083 = vmatprep.subr.mxu0 %v106_v3  ;;  %v52_v15 = vld [vmem:[%s4376_s0 + $0x58] sm:$0xff]  ;;  %v53_v16 = vld [vmem:[%s4376_s0 + $0x60] sm:$0xff]  ;;  %v54_v17 = vld [vmem:[%s4376_s0 + $0x68] sm:$0xff] }
   0x7   :  { %3084 = vmatpush3.msra.mxu0 %v106_v3  ;;  %v55_v18 = vld [vmem:[%s4376_s0 + $0x70] sm:$0xff]  ;;  %v56_v19 = vld [vmem:[%s4376_s0 + $0x78] sm:$0xff]  ;;  %v57_v20 = vld [vmem:[%s4376_s0 + $0x80] sm:$0xff] }
   0x8   :  { %3085 = vmatprep.subr.mxu0 %v105_v4  ;;  %v58_v21 = vld [vmem:[%s4376_s0 + $0x88] sm:$0xff]  ;;  %v59_v22 = vld [vmem:[%s4376_s0 + $0x90] sm:$0xff]  ;;  %v60_v23 = vld [vmem:[%s4376_s0 + $0x98] sm:$0xff] }
   0x9   :  { %3086 = vmatpush3.msra.mxu0 %v105_v4  ;;  %v61_v24 = vld [vmem:[%s4376_s0 + $0xa0] sm:$0xff]  ;;  %v62_v25 = vld [vmem:[%s4376_s0 + $0xa8] sm:$0xff]  ;;  %v63_v26 = vld [vmem:[%s4376_s0 + $0xb0] sm:$0xff]  ;;  %v3481_v4 = vmov 1983009808  }
   0xa   :  { %3088 = vmatmul.mubr.msk.f32.vlgmr.msra.gmra.mxu0 %vm116_vm1, %v42_v5  ;;  %v64_v27 = vld [vmem:[%s4376_s0 + $0xb8] sm:$0xff]  ;;  %v65_v28 = vld [vmem:[%s4376_s0 + $0xc0] sm:$0xff]  ;;  %v66_v29 = vld [vmem:[%s4376_s0 + $0xc8] sm:$0xff]  ;;  %v766_v5 = vunpack.c.l.s4 %v3481_v4 }
   0xb   :  { %3090 = vmatprep.mubr.msk.f32.mxu0 %vm116_vm1, %v43_v6  ;;  %v67_v30 = vld [vmem:[%s4376_s0 + $0xd0] sm:$0xff]  ;;  %v68_v31 = vld [vmem:[%s4376_s0 + $0xd8] sm:$0xff]  ;;  %v69_v32 = vld [vmem:[%s4376_s0 + $0xe0] sm:$0xff]  ;;  %v768_v6 = vlaneseq }
   0xc   :  { %v70_v33 = vld [vmem:[%s4376_s0 + $0xe8] sm:$0xff]  ;;  %v71_v34 = vld [vmem:[%s4376_s0 + $0xf0] sm:$0xff]  ;;  %v72_v35 = vld [vmem:[%s4376_s0 + $0xf8] sm:$0xff] }
   0xd   :  { %v73_v36 = vld [vmem:[%s4376_s0 + $0x100] sm:$0xff]  ;;  %v74_v37 = vld [vmem:[%s4376_s0 + $0x108] sm:$0xff]  ;;  %v75_v38 = vld [vmem:[%s4376_s0 + $0x110] sm:$0xff] }
   0xe   :  { %3091 = vmatmul.mubr.msk.f32.gmra.mxu0 %vm116_vm1, %v44_v7  ;;  %v76_v39 = vld [vmem:[%s4376_s0 + $0x118] sm:$0xff]  ;;  %v77_v40 = vld [vmem:[%s4376_s0 + $0x120] sm:$0xff]  ;;  %v78_v41 = vld [vmem:[%s4376_s0 + $0x128] sm:$0xff]  ;;  %v767_v7 = vunpack.c.0.s8 %v766_v5 }
   0xf   :  { %3093 = vmatprep.mubr.msk.f32.mxu0 %vm116_vm1, %v45_v8  ;;  %v79_v42 = vld [vmem:[%s4376_s0 + $0x130] sm:$0xff]  ;;  %v80_v43 = vld [vmem:[%s4376_s0 + $0x138] sm:$0xff]  ;;  %v81_v44 = vld [vmem:[%s4376_s0 + $0x140] sm:$0xff]  ;;  %v769_v8 = vshrl.u32 %v768_v6, 7 }
  0x10   :  { %v82_v45 = vld [vmem:[%s4376_s0 + $0x148] sm:$0xff]  ;;  %v83_v46 = vld [vmem:[%s4376_s0 + $0x150] sm:$0xff]  ;;  %v84_v47 = vld [vmem:[%s4376_s0 + $0x158] sm:$0xff] }
  0x11   :  { %v85_v48 = vld [vmem:[%s4376_s0 + $0x160] sm:$0xff]  ;;  %v86_v49 = vld [vmem:[%s4376_s0 + $0x168] sm:$0xff]  ;;  %v87_v50 = vld [vmem:[%s4376_s0 + $0x170] sm:$0xff] }
  0x12   :  { %3094 = vmatmul.mubr.msk.f32.gmra.mxu0 %vm116_vm1, %v46_v9  ;;  %v88_v51 = vld [vmem:[%s4376_s0 + $0x178] sm:$0xff]  ;;  %v89_v52 = vld [vmem:[%s4376_s0 + $0x180] sm:$0xff]  ;;  %v90_v53 = vld [vmem:[%s4376_s0 + $0x188] sm:$0xff]  ;;  %v770_v9 = vsub.s32 %v767_v7, %v769_v8 }
  0x13   :  { %3096 = vmatprep.mubr.msk.f32.mxu0 %vm116_vm1, %v47_v10  ;;  %v91_v54 = vld [vmem:[%s4376_s0 + $0x190] sm:$0xff]  ;;  %v92_v55 = vld [vmem:[%s4376_s0 + $0x198] sm:$0xff]  ;;  %v93_v56 = vld [vmem:[%s4376_s0 + $0x1a0] sm:$0xff] }
  0x14   :  { %v94_v57 = vld [vmem:[%s4376_s0 + $0x1a8] sm:$0xff]  ;;  %v95_v58 = vld [vmem:[%s4376_s0 + $0x1b0] sm:$0xff]  ;;  %v96_v59 = vld [vmem:[%s4376_s0 + $0x1b8] sm:$0xff] }
  0x15   :  { %v97_v60 = vld [vmem:[%s4376_s0 + $0x1c0] sm:$0xff]  ;;  %v98_v61 = vld [vmem:[%s4376_s0 + $0x1c8] sm:$0xff]  ;;  %v99_v62 = vld [vmem:[%s4376_s0 + $0x1d0] sm:$0xff] }
  0x16   :  { %3097 = vmatmul.mubr.msk.f32.gmra.mxu0 %vm116_vm1, %v48_v11  ;;  %v100_v63 = vld [vmem:[%s4376_s0 + $0x1d8] sm:$0xff]  ;;  %v101_v0 = vld [vmem:[%s4376_s0 + $0x1e0] sm:$0xff]  ;;  %v102_v1 = vld [vmem:[%s4376_s0 + $0x1e8] sm:$0xff] }
  0x17   :  { %3099 = vmatprep.mubr.msk.f32.mxu0 %vm116_vm1, %v49_v12  ;;  %v103_v2 = vld [vmem:[%s4376_s0 + $0x1f0] sm:$0xff]  ;;  %v104_v3 = vld [vmem:[%s4376_s0 + $0x1f8] sm:$0xff]  ;;  %v762_v10 = vld [vmem:[%s4377_s1] sm:$0xff] }
  0x18   :  { %v3822_v11 = vrot.slane %v762_v10, %v770_v9 }
  0x1a   :  { %3100 = vmatmul.mubr.msk.f32.gmra.mxu0 %vm116_vm1, %v50_v13  ;;  %v779_v12 = vcombine.high %v3822_v11, %v3822_v11 }
  0x1b   :  { %3102 = vmatprep.mubr.msk.f32.mxu0 %vm116_vm1, %v51_v14 }
  0x1c   :  { %849 = vmatprep.mubr.f32.mxu1 %v779_v12 }
  0x1e   :  { %3103 = vmatmul.mubr.msk.f32.gmra.mxu0 %vm116_vm1, %v52_v15 }
  0x1f   :  { %3105 = vmatprep.mubr.msk.f32.mxu0 %vm116_vm1, %v53_v16 }
  0x22   :  { %3106 = vmatmul.mubr.msk.f32.gmra.mxu0 %vm116_vm1, %v54_v17 }
  0x23   :  { %3108 = vmatprep.mubr.msk.f32.mxu0 %vm116_vm1, %v55_v18 }
  0x26   :  { %3109 = vmatmul.mubr.msk.f32.gmra.mxu0 %vm116_vm1, %v56_v19 }
  0x27   :  { %3111 = vmatprep.mubr.msk.f32.mxu0 %vm116_vm1, %v57_v20 }
  0x2a   :  { %3112 = vmatmul.mubr.msk.f32.gmra.mxu0 %vm116_vm1, %v58_v21 }
  0x2b   :  { %3114 = vmatprep.mubr.msk.f32.mxu0 %vm116_vm1, %v59_v22 }
  0x2e   :  { %3115 = vmatmul.mubr.msk.f32.gmra.mxu0 %vm116_vm1, %v60_v23 }
  0x2f   :  { %3117 = vmatprep.mubr.msk.f32.mxu0 %vm116_vm1, %v61_v24 }
  0x32   :  { %3118 = vmatmul.mubr.msk.f32.gmra.mxu0 %vm116_vm1, %v62_v25 }
  0x33   :  { %3120 = vmatprep.mubr.msk.f32.mxu0 %vm116_vm1, %v63_v26  ;;  %v764_v26 = vcombine.high %v762_v10, %v762_v10 }
  0x36   :  { %3121 = vmatmul.mubr.msk.f32.gmra.mxu0 %vm116_vm1, %v64_v27 }
  0x37   :  { %3123 = vmatprep.mubr.msk.f32.mxu0 %vm116_vm1, %v65_v28 }
  0x3a   :  { %3124 = vmatmul.mubr.msk.f32.gmra.mxu0 %vm116_vm1, %v66_v29  ;;  %v3844_v29 = vrot.slane %v764_v26, %v770_v9 }
  0x3b   :  { %3126 = vmatprep.mubr.msk.f32.mxu0 %vm116_vm1, %v67_v30 }
  0x3e   :  { %3127 = vmatmul.mubr.msk.f32.gmra.mxu0 %vm116_vm1, %v68_v31 }
  0x3f   :  { %3129 = vmatprep.mubr.msk.f32.mxu0 %vm116_vm1, %v69_v32 }
  0x42   :  { %3130 = vmatmul.mubr.msk.f32.gmra.mxu0 %vm116_vm1, %v70_v33 }
  0x43   :  { %3132 = vmatprep.mubr.msk.f32.mxu0 %vm116_vm1, %v71_v34 }
  0x46   :  { %3133 = vmatmul.mubr.msk.f32.gmra.mxu0 %vm116_vm1, %v72_v35 }
  0x47   :  { %3135 = vmatprep.mubr.msk.f32.mxu0 %vm116_vm1, %v73_v36 }
  0x4a   :  { %3136 = vmatmul.mubr.msk.f32.gmra.mxu0 %vm116_vm1, %v74_v37 }
  0x4b   :  { %3138 = vmatprep.mubr.msk.f32.mxu0 %vm116_vm1, %v75_v38 }
  0x4e   :  { %3139 = vmatmul.mubr.msk.f32.gmra.mxu0 %vm116_vm1, %v76_v39 }
  0x4f   :  { %3141 = vmatprep.mubr.msk.f32.mxu0 %vm116_vm1, %v77_v40 }
  0x52   :  { %3142 = vmatmul.mubr.msk.f32.gmra.mxu0 %vm116_vm1, %v78_v41 }
  0x53   :  { %3144 = vmatprep.mubr.msk.f32.mxu0 %vm116_vm1, %v79_v42 }
  0x56   :  { %3145 = vmatmul.mubr.msk.f32.gmra.mxu0 %vm116_vm1, %v80_v43 }
  0x57   :  { %3147 = vmatprep.mubr.msk.f32.mxu0 %vm116_vm1, %v81_v44 }
  0x5a   :  { %3148 = vmatmul.mubr.msk.f32.gmra.mxu0 %vm116_vm1, %v82_v45  ;;  %v3861_v45 = vld [vmem:[%s4378_s3] ss:$0 sm:$0xff] }
  0x5b   :  { %3150 = vmatprep.mubr.msk.f32.mxu0 %vm116_vm1, %v83_v46 }
  0x5e   :  { %3151 = vmatmul.mubr.msk.f32.gmra.mxu0 %vm116_vm1, %v84_v47 }
  0x5f   :  { %3153 = vmatprep.mubr.msk.f32.mxu0 %vm116_vm1, %v85_v48 }
  0x62   :  { %3154 = vmatmul.mubr.msk.f32.gmra.mxu0 %vm116_vm1, %v86_v49 }
  0x63   :  { %3156 = vmatprep.mubr.msk.f32.mxu0 %vm116_vm1, %v87_v50 }
  0x66   :  { %3157 = vmatmul.mubr.msk.f32.gmra.mxu0 %vm116_vm1, %v88_v51 }
  0x67   :  { %3159 = vmatprep.mubr.msk.f32.mxu0 %vm116_vm1, %v89_v52 }
  0x6a   :  { %3160 = vmatmul.mubr.msk.f32.gmra.mxu0 %vm116_vm1, %v90_v53 }
  0x6b   :  { %3162 = vmatprep.mubr.msk.f32.mxu0 %vm116_vm1, %v91_v54 }
  0x6e   :  { %3163 = vmatmul.mubr.msk.f32.gmra.mxu0 %vm116_vm1, %v92_v55 }
  0x6f   :  { %3165 = vmatprep.mubr.msk.f32.mxu0 %vm116_vm1, %v93_v56 }
  0x72   :  { %3166 = vmatmul.mubr.msk.f32.gmra.mxu0 %vm116_vm1, %v94_v57 }
  0x73   :  { %3168 = vmatprep.mubr.msk.f32.mxu0 %vm116_vm1, %v95_v58 }
  0x76   :  { %3169 = vmatmul.mubr.msk.f32.gmra.mxu0 %vm116_vm1, %v96_v59 }
  0x77   :  { %3171 = vmatprep.mubr.msk.f32.mxu0 %vm116_vm1, %v97_v60 }
  0x7a   :  { %3172 = vmatmul.mubr.msk.f32.gmra.mxu0 %vm116_vm1, %v98_v61 }
  0x7b   :  { %3174 = vmatprep.mubr.msk.f32.mxu0 %vm116_vm1, %v99_v62 }
  0x7e   :  { %3175 = vmatmul.mubr.msk.f32.gmra.mxu0 %vm116_vm1, %v100_v63 }
  0x7f   :  { %3177 = vmatprep.mubr.msk.f32.mxu0 %vm116_vm1, %v101_v0 }
  0x82   :  { %3178 = vmatmul.mubr.msk.f32.gmra.mxu0 %vm116_vm1, %v102_v1 }
  0x83   :  { %3180 = vmatprep.mubr.msk.f32.mxu0 %vm116_vm1, %v103_v2 }
  0x86   :  { %3181 = vmatmul.mubr.msk.f32.gmra.mxu0 %vm116_vm1, %v104_v3 }
  0xca   :  { %v3826_v13 = vpop.f32.mrf.mxu0 }
  0xcc   :  { %v3828_v14 = vpop.f32.mrf.mxu0 }
  0xce   :  { %v3830_v15 = vpop.f32.mrf.mxu0 }
  0xd0   :  { %v3832_v16 = vpop.f32.mrf.mxu0 }
  0xd2   :  { %v3834_v17 = vpop.f32.mrf.mxu0 }
  0xd4   :  { %v3836_v18 = vpop.f32.mrf.mxu0 }
  0xd6   :  { %v3838_v19 = vpop.f32.mrf.mxu0 }
  0xd8   :  { %v3840_v20 = vpop.f32.mrf.mxu0 }
  0xda   :  { %v3101_v21 = vpop.f32.mrf.mxu0 }
  0xdb   :  { %v425_v10 = vadd.f32 %v3101_v21, %v3861_v45  ;;  %v415_v21 = vadd.f32 %v3838_v19, %v3861_v45  ;;  %v405_v19 = vadd.f32 %v3834_v17, %v3861_v45 }
  0xdc   :  { %v3842_v22 = vpop.f32.mrf.mxu0 }
  0xde   :  { %v3104_v23 = vpop.f32.mrf.mxu0 }
  0xdf   :  { %v435_v0 = vadd.f32 %v3104_v23, %v3861_v45 }
  0xe0   :  { %v429_v24 = vpop.f32.mrf.mxu0 }
  0xe1   :  { %v430_v5 = vadd.f32 %v3861_v45, %v429_v24  ;;  %v709_v12 = vmax.f32 %v435_v0, 0.0  ;;  %v420_v24 = vadd.f32 %v3861_v45, %v3842_v22  ;;  %v410_v22 = vadd.f32 %v3861_v45, %v3840_v20 }
  0xe2   :  { %v3107_v25 = vpop.f32.mrf.mxu0 }
  0xe3   :  { %v445_v54 = vadd.f32 %v3107_v25, %v3861_v45 }
  0xe4   :  { %v439_v27 = vpop.f32.mrf.mxu0 }
  0xe5   :  { %v440_v59 = vadd.f32 %v3861_v45, %v439_v27  ;;  %v711_v1 = vmax.f32 %v445_v54, 0.0  ;;  %v708_v27 = vmax.f32 %v430_v5, 0.0  ;;  %v703_v54 = vmax.f32 %v405_v19, 0.0 }
  0xe6   :  { %v3110_v28 = vpop.f32.mrf.mxu0 }
  0xe7   :  { %v455_v46 = vadd.f32 %v3110_v28, %v3861_v45  ;;  %v710_v6 = vmax.f32 %v440_v59, 0.0 }
  0xe8   :  { %v449_v30 = vpop.f32.mrf.mxu0 }
  0xe9   :  { %v450_v49 = vadd.f32 %v3861_v45, %v449_v30  ;;  %v713_v55 = vmax.f32 %v455_v46, 0.0 }
  0xea   :  { %v3846_v31 = vpop.f32.mrf.mxu0 }
  0xeb   :  { %v712_v60 = vmax.f32 %v450_v49, 0.0 }
  0xec   :  { %v3848_v32 = vpop.f32.mrf.mxu0 }
  0xee   :  { %v3850_v33 = vpop.f32.mrf.mxu0 }
  0xf0   :  { %v3852_v34 = vpop.f32.mrf.mxu0 }
  0xf2   :  { %v3854_v35 = vpop.f32.mrf.mxu0 }
  0xf4   :  { %v3856_v36 = vpop.f32.mrf.mxu0 }
  0xf6   :  { %v3122_v37 = vpop.f32.mrf.mxu0 }
  0xf7   :  { %v495_v30 = vadd.f32 %v3122_v37, %v3861_v45  ;;  %v485_v37 = vadd.f32 %v3854_v35, %v3861_v45  ;;  %v475_v35 = vadd.f32 %v3850_v33, %v3861_v45  ;;  %v465_v33 = vadd.f32 %v3846_v31, %v3861_v45 }
  0xf8   :  { %v489_v38 = vpop.f32.mrf.mxu0 }
  0xf9   :  { %v719_v17 = vmax.f32 %v485_v37, 0.0  ;;  %v715_v31 = vmax.f32 %v465_v33, 0.0 }
  0xfa   :  { %v3125_v39 = vpop.f32.mrf.mxu0 }
  0xfb   :  { %v505_v8 = vadd.f32 %v3125_v39, %v3861_v45 }
  0xfc   :  { %v499_v40 = vpop.f32.mrf.mxu0 }
  0xfd   :  { %v500_v25 = vadd.f32 %v3861_v45, %v499_v40  ;;  %v723_v39 = vmax.f32 %v505_v8, 0.0  ;;  %v490_v40 = vadd.f32 %v3861_v45, %v489_v38  ;;  %v480_v38 = vadd.f32 %v3861_v45, %v3856_v36 }
  0xfe   :  { %v3128_v41 = vpop.f32.mrf.mxu0  ;;  %v470_v36 = vadd.f32 %v3861_v45, %v3852_v34  ;;  %v460_v34 = vadd.f32 %v3861_v45, %v3848_v32  ;;  %v780_v32 = vcombine.high %v3844_v29, %v3844_v29 }
  0xff   :  { %v515_v62 = vadd.f32 %v3128_v41, %v3861_v45  ;;  %v707_v41 = vmax.f32 %v425_v10, 0.0  ;;  %v720_v20 = vmax.f32 %v490_v40, 0.0 }
 0x100   :  { %v509_v42 = vpop.f32.mrf.mxu0  ;;  %v716_v0 = vmax.f32 %v470_v36, 0.0 }
 0x101   :  { %v510_v3 = vadd.f32 %v3861_v45, %v509_v42  ;;  %v725_v9 = vmax.f32 %v515_v62, 0.0 }
 0x102   :  { %v3131_v43 = vpop.f32.mrf.mxu0 }
 0x103   :  { %v525_v51 = vadd.f32 %v3131_v43, %v3861_v45  ;;  %v724_v26 = vmax.f32 %v510_v3, 0.0  ;;  %v722_v43 = vmax.f32 %v500_v25, 0.0 }
 0x104   :  { %v519_v44 = vpop.f32.mrf.mxu0 }
 0x105   :  { %v520_v57 = vadd.f32 %v3861_v45, %v519_v44  ;;  %v727_v63 = vmax.f32 %v525_v51, 0.0  ;;  %v706_v44 = vmax.f32 %v420_v24, 0.0  ;;  %v704_v51 = vmax.f32 %v410_v22, 0.0 }
 0x106   :  { %v3134_v47 = vpop.f32.mrf.mxu0 }
 0x107   :  { %v535_v48 = vadd.f32 %v3134_v47, %v3861_v45  ;;  %v726_v4 = vmax.f32 %v520_v57, 0.0  ;;  %v721_v47 = vmax.f32 %v495_v30, 0.0  ;;  %v390_v57 = vadd.f32 %v3861_v45, %v3832_v16 }
 0x108   :  { %v529_v50 = vpop.f32.mrf.mxu0  ;;  %v380_v16 = vadd.f32 %v3861_v45, %v3828_v14 }
 0x109   :  { %v530_v52 = vadd.f32 %v3861_v45, %v529_v50  ;;  %v729_v53 = vmax.f32 %v535_v48, 0.0  ;;  %v705_v48 = vmax.f32 %v415_v21, 0.0  ;;  %v400_v50 = vadd.f32 %v3861_v45, %v3836_v18 }
 0x10a   :  { %v3869_v56 = vpop.f32.mrf.mxu0  ;;  %v718_v18 = vmax.f32 %v480_v38, 0.0 }
 0x10b   :  { %v728_v58 = vmax.f32 %v530_v52, 0.0  ;;  %2910 = vmatprep.subr.mxu1 %v729_v53  ;;  %v395_v53 = vadd.f32 %v3830_v15, %v3861_v45  ;;  %v717_v15 = vmax.f32 %v475_v35, 0.0 }
 0x10c   :  { %v3873_v61 = vpop.f32.mrf.mxu0  ;;  %2911 = vmatpush3.msra.mxu1 %v713_v55 }
 0x10d   :  { %2912 = vmatprep.subr.mxu1 %v728_v58  ;;  %v702_v58 = vmax.f32 %v400_v50, 0.0  ;;  %v701_v62 = vmax.f32 %v395_v53, 0.0 }
 0x10e   :  { %v3877_v2 = vpop.f32.mrf.mxu0  ;;  %2913 = vmatpush3.msra.mxu1 %v712_v60  ;;  %v385_v60 = vadd.f32 %v3826_v13, %v3861_v45  ;;  %v714_v13 = vmax.f32 %v460_v34, 0.0 }
 0x10f   :  { %2914 = vmatprep.subr.mxu1 %v727_v63 }
 0x110   :  { %v3881_v7 = vpop.f32.mrf.mxu0  ;;  %2915 = vmatpush3.msra.mxu1 %v711_v1  ;;  %v700_v1 = vmax.f32 %v390_v57, 0.0 }
 0x111   :  { %2916 = vmatprep.subr.mxu1 %v726_v4  ;;  %v699_v4 = vmax.f32 %v385_v60, 0.0 }
 0x112   :  { %v3885_v23 = vpop.f32.mrf.mxu0  ;;  %2917 = vmatpush3.msra.mxu1 %v710_v6  ;;  %v698_v6 = vmax.f32 %v380_v16, 0.0 }
 0x113   :  { %2918 = vmatprep.subr.mxu1 %v725_v9 }
 0x114   :  { %v3890_v28 = vpop.f32.mrf.mxu0  ;;  %2919 = vmatpush3.msra.mxu1 %v709_v12 }
 0x115   :  { %2920 = vmatprep.subr.mxu1 %v724_v26 }
 0x116   :  { %v3895_v42 = vpop.f32.mrf.mxu0  ;;  %2921 = vmatpush3.msra.mxu1 %v708_v27 }
 0x117   :  { %2922 = vmatprep.subr.mxu1 %v723_v39 }
 0x118   :  { %v3900_v46 = vpop.f32.mrf.mxu0  ;;  %2923 = vmatpush3.msra.mxu1 %v707_v41 }
 0x119   :  { %2924 = vmatprep.subr.mxu1 %v722_v43 }
 0x11a   :  { %v3906_v49 = vpop.f32.mrf.mxu0  ;;  %2925 = vmatpush3.msra.mxu1 %v706_v44 }
 0x11b   :  { %2926 = vmatprep.subr.mxu1 %v721_v47  ;;  %v585_v34 = vadd.f32 %v3906_v49, %v3861_v45 }
 0x11c   :  { %v3912_v52 = vpop.f32.mrf.mxu0  ;;  %2927 = vmatpush3.msra.mxu1 %v705_v48 }
 0x11d   :  { %2928 = vmatprep.subr.mxu1 %v720_v20 }
 0x11e   :  { %v3918_v55 = vpop.f32.mrf.mxu0  ;;  %2929 = vmatpush3.msra.mxu1 %v704_v51 }
 0x11f   :  { %2930 = vmatprep.subr.mxu1 %v719_v17 }
 0x120   :  { %v3924_v59 = vpop.f32.mrf.mxu0  ;;  %2931 = vmatpush3.msra.mxu1 %v703_v54 }
 0x121   :  { %2932 = vmatprep.subr.mxu1 %v718_v18  ;;  %v595_v18 = vadd.f32 %v3918_v55, %v3861_v45 }
 0x122   :  { %v3155_v63 = vpop.f32.mrf.mxu0  ;;  %2933 = vmatpush3.msra.mxu1 %v702_v58 }
 0x123   :  { %2934 = vmatprep.subr.mxu1 %v717_v15  ;;  %v605_v20 = vadd.f32 %v3155_v63, %v3861_v45  ;;  %v590_v15 = vadd.f32 %v3861_v45, %v3924_v59 }
 0x124   :  { %v599_v3 = vpop.f32.mrf.mxu0  ;;  %2935 = vmatpush3.msra.mxu1 %v701_v62 }
 0x125   :  { %2936 = vmatprep.subr.mxu1 %v716_v0  ;;  %v600_v17 = vadd.f32 %v3861_v45, %v599_v3  ;;  %v743_v57 = vmax.f32 %v605_v20, 0.0  ;;  %v741_v0 = vmax.f32 %v595_v18, 0.0  ;;  %v740_v3 = vmax.f32 %v590_v15, 0.0  ;;  %v4054_v18 = vld [vmem:[%s4381_s7 + $0x10] sm:$0xff] }
 0x126   :  { %v3158_v5 = vpop.f32.mrf.mxu0  ;;  %2937 = vmatpush3.msra.mxu1 %v700_v1  ;;  %v580_v1 = vadd.f32 %v3861_v45, %v3912_v52 }
 0x127   :  { %2938 = vmatprep.subr.mxu1 %v715_v31  ;;  %v742_v60 = vmax.f32 %v600_v17, 0.0 }
 0x128   :  { %v609_v8 = vpop.f32.mrf.mxu0  ;;  %2939 = vmatpush3.msra.mxu1 %v699_v4  ;;  %v575_v4 = vadd.f32 %v3895_v42, %v3861_v45 }
 0x129   :  { %2940 = vmatprep.subr.mxu1 %v714_v13  ;;  %v610_v37 = vadd.f32 %v3861_v45, %v609_v8  ;;  %v738_v8 = vmax.f32 %v580_v1, 0.0 }
 0x12a   :  { %v3936_v9 = vpop.f32.mrf.mxu0  ;;  %2941 = vmatpush3.msra.mxu1 %v698_v6  ;;  %v570_v6 = vadd.f32 %v3861_v45, %v3900_v46 }
 0x12b   :  { %850 = vmatmul.mubr.f32.vlgmr.msra.gmra.mxu1 %v3822_v11  ;;  %v615_v11 = vadd.f32 %v3158_v5, %v3861_v45  ;;  %v744_v53 = vmax.f32 %v610_v37, 0.0  ;;  %v739_v5 = vmax.f32 %v585_v34, 0.0 }
 0x12c   :  { %v3939_v14 = vpop.f32.mrf.mxu0  ;;  %919 = vmatprep.mubr.f32.mxu1 %v780_v32  ;;  %v736_v46 = vmax.f32 %v570_v6, 0.0 }
 0x12d   :  { %v745_v50 = vmax.f32 %v615_v11, 0.0 }
 0x12e   :  { %v3941_v10 = vpop.f32.mrf.mxu0 }
 0x130   :  { %v3943_v12 = vpop.f32.mrf.mxu0 }
 0x132   :  { %v3167_v25 = vpop.f32.mrf.mxu0 }
 0x133   :  { %v645_v52 = vadd.f32 %v3167_v25, %v3861_v45  ;;  %v635_v25 = vadd.f32 %v3941_v10, %v3861_v45  ;;  %v625_v10 = vadd.f32 %v3936_v9, %v3861_v45 }
 0x134   :  { %v3945_v26 = vpop.f32.mrf.mxu0 }
 0x135   :  { %v640_v42 = vadd.f32 %v3861_v45, %v3945_v26  ;;  %v630_v26 = vadd.f32 %v3861_v45, %v3943_v12  ;;  %v749_v11 = vmax.f32 %v635_v25, 0.0  ;;  %v620_v12 = vadd.f32 %v3861_v45, %v3939_v14  ;;  %v4023_v14 = vld [vmem:[%s4380_s8 + $0x8] sm:$0xff] }
 0x136   :  { %v3170_v24 = vpop.f32.mrf.mxu0 }
 0x137   :  { %v655_v59 = vadd.f32 %v3170_v24, %v3861_v45  ;;  %v565_v24 = vadd.f32 %v3885_v23, %v3861_v45  ;;  %v555_v23 = vadd.f32 %v3877_v2, %v3861_v45  ;;  %v545_v2 = vadd.f32 %v3869_v56, %v3861_v45 }
 0x138   :  { %v649_v27 = vpop.f32.mrf.mxu0  ;;  %v3482_v56 = vmov 0.0  }
 0x139   :  { %v650_v49 = vadd.f32 %v3861_v45, %v649_v27  ;;  %v753_v32 = vmax.f32 %v655_v59, 0.0  ;;  %v731_v9 = vmax.f32 %v545_v2, 0.0  ;;  %3298 = vmatprep.subr.mxu0 %v3482_v56  ;;  %3306 = vmatprep.mubr.msk.f32.mxu0 %vm3483_vm2, %v3482_v56 }
 0x13a   :  { %v3173_v30 = vpop.f32.mrf.mxu0 }
 0x13b   :  { %v665_v62 = vadd.f32 %v3173_v30, %v3861_v45  ;;  %v737_v30 = vmax.f32 %v575_v4, 0.0  ;;  %v752_v27 = vmax.f32 %v650_v49, 0.0 }
 0x13c   :  { %v659_v39 = vpop.f32.mrf.mxu0 }
 0x13d   :  { %v660_v55 = vadd.f32 %v3861_v45, %v659_v39  ;;  %v755_v31 = vmax.f32 %v665_v62, 0.0  ;;  %v560_v39 = vadd.f32 %v3861_v45, %v3890_v28  ;;  %v550_v28 = vadd.f32 %v3861_v45, %v3881_v7 }
 0x13e   :  { %v3176_v21 = vpop.f32.mrf.mxu0  ;;  %v540_v7 = vadd.f32 %v3861_v45, %v3873_v61  ;;  %v4016_v61 = vld [vmem:[%s4380_s8 + $0x10] sm:$0xff] }
 0x13f   :  { %v675_v54 = vadd.f32 %v3176_v21, %v3861_v45  ;;  %v754_v13 = vmax.f32 %v660_v55, 0.0  ;;  %v751_v21 = vmax.f32 %v645_v52, 0.0  ;;  %v732_v37 = vmax.f32 %v550_v28, 0.0 }
 0x140   :  { %v669_v41 = vpop.f32.mrf.mxu0 }
 0x141   :  { %v670_v58 = vadd.f32 %v3861_v45, %v669_v41  ;;  %v757_v63 = vmax.f32 %v675_v54, 0.0  ;;  %v735_v41 = vmax.f32 %v565_v24, 0.0 }
 0x142   :  { %v3179_v40 = vpop.f32.mrf.mxu0 }
 0x143   :  { %v685_v19 = vadd.f32 %v3179_v40, %v3861_v45  ;;  %v756_v16 = vmax.f32 %v670_v58, 0.0  ;;  %v750_v40 = vmax.f32 %v640_v42, 0.0  ;;  %v4072_v58 = vld [vmem:[%s4381_s7] sm:$0xff] }
 0x144   :  { %v679_v43 = vpop.f32.mrf.mxu0 }
 0x145   :  { %v680_v51 = vadd.f32 %v3861_v45, %v679_v43  ;;  %v759_v36 = vmax.f32 %v685_v19, 0.0  ;;  %v734_v43 = vmax.f32 %v560_v39, 0.0  ;;  %v746_v19 = vmax.f32 %v620_v12, 0.0  ;;  %v1202_v39 = vld [vmem:[%s4384_s6] sm:$0x3] }
 0x146   :  { %v3182_v22 = vpop.f32.mrf.mxu0 }
 0x147   :  { %v695_v44 = vadd.f32 %v3182_v22, %v3861_v45  ;;  %v758_v33 = vmax.f32 %v680_v51, 0.0  ;;  %v733_v22 = vmax.f32 %v555_v23, 0.0 }
 0x148   :  { %v689_v47 = vpop.f32.mrf.mxu0 }
 0x149   :  { %v761_v48 = vmax.f32 %v695_v44, 0.0  ;;  %v690_v38 = vadd.f32 %v3861_v45, %v689_v47  ;;  %v748_v44 = vmax.f32 %v630_v26, 0.0  ;;  %v747_v47 = vmax.f32 %v625_v10, 0.0  ;;  %v925_v45 = vld [vmem:[%s4379_s4] sm:$0xff] }
 0x14b   :  { %v760_v35 = vmax.f32 %v690_v38, 0.0  ;;  %2945 = vmatprep.subr.mxu1 %v761_v48  ;;  %v730_v48 = vmax.f32 %v540_v7, 0.0  ;;  %v4030_v38 = vld [vmem:[%s4380_s8] sm:$0xff] }
 0x14c   :  { %2946 = vmatpush3.msra.mxu1 %v745_v50 }
 0x14d   :  { %2947 = vmatprep.subr.mxu1 %v760_v35 }
 0x14e   :  { %2948 = vmatpush3.msra.mxu1 %v744_v53 }
 0x14f   :  { %2949 = vmatprep.subr.mxu1 %v759_v36  ;;  %v4046_v36 = vld [vmem:[%s4381_s7 + $0x18] sm:$0xff] }
 0x150   :  { %2950 = vmatpush3.msra.mxu1 %v743_v57  ;;  %v4065_v57 = vld [vmem:[%s4381_s7 + $0x8] sm:$0xff] }
 0x151   :  { %2951 = vmatprep.subr.mxu1 %v758_v33  ;;  %v2802_v33 = vld [vmem:[%s4382_s5] ss:$0 sm:$0xff] }
 0x152   :  { %2952 = vmatpush3.msra.mxu1 %v742_v60 }
 0x153   :  { %2953 = vmatprep.subr.mxu1 %v757_v63 }
 0x154   :  { %2954 = vmatpush3.msra.mxu1 %v741_v0  ;;  %v4093_v0 = vld [vmem:[%s4383_s9] ss:$0 sm:$0xff]  ;;  %s3485_s9 = smov 32  }
 0x155   :  { %2955 = vmatprep.subr.mxu1 %v756_v16 }
 0x156   :  { %2956 = vmatpush3.msra.mxu1 %v740_v3 }
 0x157   :  { %2957 = vmatprep.subr.mxu1 %v755_v31 }
 0x158   :  { %2958 = vmatpush3.msra.mxu1 %v739_v5 }
 0x159   :  { %2959 = vmatprep.subr.mxu1 %v754_v13 }
 0x15a   :  { %2960 = vmatpush3.msra.mxu1 %v738_v8 }
 0x15b   :  { %2961 = vmatprep.subr.mxu1 %v753_v32 }
 0x15c   :  { %2962 = vmatpush3.msra.mxu1 %v737_v30 }
 0x15d   :  { %2963 = vmatprep.subr.mxu1 %v752_v27 }
 0x15e   :  { %2964 = vmatpush3.msra.mxu1 %v736_v46 }
 0x15f   :  { %2965 = vmatprep.subr.mxu1 %v751_v21 }
 0x160   :  { %2966 = vmatpush3.msra.mxu1 %v735_v41 }
 0x161   :  { %2967 = vmatprep.subr.mxu1 %v750_v40 }
 0x162   :  { %2968 = vmatpush3.msra.mxu1 %v734_v43 }
 0x163   :  { %2969 = vmatprep.subr.mxu1 %v749_v11 }
 0x164   :  { %2970 = vmatpush3.msra.mxu1 %v733_v22 }
 0x165   :  { %2971 = vmatprep.subr.mxu1 %v748_v44 }
 0x166   :  { %2972 = vmatpush3.msra.mxu1 %v732_v37 }
 0x167   :  { %2973 = vmatprep.subr.mxu1 %v747_v47 }
 0x168   :  { %2974 = vmatpush3.msra.mxu1 %v731_v9 }
 0x169   :  { %2975 = vmatprep.subr.mxu1 %v746_v19 }
 0x16a   :  { %2976 = vmatpush3.msra.mxu1 %v730_v48  ;;  %v2810_v48 = vld [vmem:[%s4384_s6 + $0x2] sm:$0x3] }
 0x16b   :  { %920 = vmatmul.mubr.f32.vlgmr.msra.gmra.mxu1 %v3844_v29  ;;  %3183 = vmatprep.subr.mxu1 %v3482_v56  ;;  %v4010_v29 = vld [vmem:[%s4380_s8 + $0x18] sm:$0xff] }
 0x16c   :  { %3184 = vmatpush3.msra.mxu1 %v925_v45  ;;  %3185 = vmatprep.mubr.msk.f32.mxu1 %vm3483_vm2, %v3482_v56 }
 0x16d   :  { %3188 = vmatprep.subr.mxu1 %v3482_v56  ;;  %3299 = vmatpush3.msra.mxu0 %v4010_v29 }
 0x16e   :  { %3300 = vmatprep.subr.mxu0 %v3482_v56 }
 0x16f   :  { %3301 = vmatpush3.msra.mxu0 %v4016_v61 }
 0x170   :  { %3302 = vmatprep.subr.mxu0 %v3482_v56 }
 0x171   :  { %3303 = vmatpush3.msra.mxu0 %v4023_v14 }
 0x172   :  { %3304 = vmatprep.subr.mxu0 %v3482_v56 }
 0x173   :  { %3305 = vmatpush3.msra.mxu0 %v4030_v38 }
 0x174   :  { %3320 = vmatprep.subr.mxu0 %v3482_v56 }
 0x1eb   :  { %v2942_v20 = vpop.f32.mrf.mxu1 }
 0x1ed   :  { %v2943_v50 = vpop.f32.mrf.mxu1 }
 0x1ee   :  { %v2944_v17 = vadd.f32 %v2943_v50, %v2942_v20 }
 0x22b   :  { %v2977_v51 = vpop.f32.mrf.mxu1 }
 0x22d   :  { %v2978_v35 = vpop.f32.mrf.mxu1 }
 0x22e   :  { %v2979_v53 = vadd.f32 %v2978_v35, %v2977_v51 }
 0x230   :  { %v922_v54 = vadd.f32 %v2979_v53, %v2944_v17 }
 0x232   :  { %3186 = vmatmul.mubr.msk.f32.vlgmr.msra.gmra.mxu1 %vm933_vm3, %v922_v54 }
 0x233   :  { %3189 = vmatpush3.msra.mxu1 %v4010_v29  ;;  %3196 = vmatprep.mubr.msk.f32.mxu1 %vm3483_vm2, %v3482_v56 }
 0x234   :  { %3190 = vmatprep.subr.mxu1 %v3482_v56 }
 0x235   :  { %3191 = vmatpush3.msra.mxu1 %v4016_v61 }
 0x236   :  { %3192 = vmatprep.subr.mxu1 %v3482_v56 }
 0x237   :  { %3193 = vmatpush3.msra.mxu1 %v4023_v14 }
 0x238   :  { %3194 = vmatprep.subr.mxu1 %v3482_v56 }
 0x239   :  { %3195 = vmatpush3.msra.mxu1 %v4030_v38 }
 0x23a   :  { %3197 = vmatmul.mubr.f32.vlgmr.msra.gmra.mxu1 %v3482_v56  ;;  %3199 = vmatprep.subr.mxu1 %v3482_v56 }
 0x23b   :  { %3200 = vmatpush3.msra.mxu1 %v4046_v36  ;;  %3207 = vmatprep.mubr.msk.f32.mxu1 %vm3483_vm2, %v3482_v56 }
 0x23c   :  { %3201 = vmatprep.subr.mxu1 %v3482_v56 }
 0x23d   :  { %3202 = vmatpush3.msra.mxu1 %v4054_v18 }
 0x23e   :  { %3203 = vmatprep.subr.mxu1 %v3482_v56 }
 0x23f   :  { %3204 = vmatpush3.msra.mxu1 %v4065_v57 }
 0x240   :  { %3205 = vmatprep.subr.mxu1 %v3482_v56 }
 0x241   :  { %3206 = vmatpush3.msra.mxu1 %v4072_v58 }
 0x242   :  { %3210 = vmatprep.subr.mxu1 %v3482_v56 }
 0x2f2   :  { %v1003_v15 = vpop.f32.mrf.mxu1 }
 0x2f3   :  { %v1004_v60 = vadd.f32 %v2802_v33, %v1003_v15 }
 0x2f4   :  { %v3187_v62 = vpop.f32.mrf.mxu1 }
 0x2f5   :  { %3208 = vmatmul.mubr.msk.f32.vlgmr.msra.gmra.mxu1 %vm1022_vm4, %v1004_v60 }
 0x2f6   :  { %3211 = vmatpush3.msra.mxu1 %v4010_v29  ;;  %3218 = vmatprep.mubr.msk.f32.mxu1 %vm3483_vm2, %v3482_v56 }
 0x2f7   :  { %3212 = vmatprep.subr.mxu1 %v3482_v56 }
 0x2f8   :  { %3213 = vmatpush3.msra.mxu1 %v4016_v61 }
 0x2f9   :  { %3214 = vmatprep.subr.mxu1 %v3482_v56 }
 0x2fa   :  { %v1092_v63 = vpop.f32.mrf.mxu1  ;;  %3215 = vmatpush3.msra.mxu1 %v4023_v14 }
 0x2fb   :  { %3216 = vmatprep.subr.mxu1 %v3482_v56 }
 0x2fc   :  { %v3198_v34 = vpop.f32.mrf.mxu1  ;;  %3217 = vmatpush3.msra.mxu1 %v4030_v38 }
 0x2fd   :  { %3221 = vmatprep.subr.mxu1 %v3482_v56 }
 0x3b5   :  { %v1165_v55 = vpop.f32.mrf.mxu1 }
 0x3b6   :  { %v1166_v16 = vadd.f32 %v1165_v55, %v1092_v63 }
 0x3b7   :  { %v3209_v1 = vpop.f32.mrf.mxu1 }
 0x3b8   :  { %v1169_v3 = vadd.f32 %v4093_v0, %v1166_v16 }
 0x3ba   :  { %3409 = vtanh.f32 %v1169_v3  ;;  %v2806_v31 = vmul.f32 -1.442695, %v1169_v3 }
 0x3bc   :  { %3411 = vpow2.f32 %v2806_v31 }
 0x3c7   :  { %v3410_v59 = vpop.eup %3409 }
 0x3c8   :  { %1179 = vrot.lane.b32.xlu0 %v3410_v59, %s3484_s24 }
 0x3c9   :  { %v3412_v4 = vpop.eup %3411 }
 0x3ca   :  { %v1173_v5 = vadd.f32 1.0, %v3412_v4  ;;  %v2814_v4 = vld [vmem:[%s4384_s6 + $0x4] sm:$0x3] }
 0x3cc   :  { %3413 = vrcp.f32 %v1173_v5 }
 0x3d9   :  { %v3414_v49 = vpop.eup %3413 }
 0x3da   :  { %v1177_v8 = vmul.f32 0.0, %v3414_v49 }
 0x43a   :  { %v1180_v13 = vpop.permute.xlu0 %1179 }
 0x43b   :  { %v1182_v6 = vmul.f32 %v3414_v49, %v1180_v13 }
 0x43d   :  { %1184 = vrot.lane.b32.xlu0 %v1182_v6, %s3485_s9 }
 0x4af   :  { %v1185_v52 = vpop.permute.xlu0 %1184 }
 0x4b0   :  { %v1187_v32 = vadd.f32 %v1185_v52, %v1177_v8 }
 0x4b2   :  { %3415 = vtanh.f32 %v1187_v32 }
 0x4bf   :  { %v3416_v24 = vpop.eup %3415 }
 0x4c0   :  { %1190 = vrot.lane.b32.xlu1 %v3416_v24, %s3484_s24 }
 0x532   :  { %v1191_v30 = vpop.permute.xlu1 %1190 }
 0x533   :  { %v1193_v42 = vmul.f32 %v3414_v49, %v1191_v30 }
 0x535   :  { %1195 = vrot.lane.b32.xlu1 %v1193_v42, %s3485_s9 }
 0x5a7   :  { %v1196_v27 = vpop.permute.xlu1 %1195 }
 0x5a8   :  { %1199 = vst.msk [vmem:[#allocation2] sm:$0x1] %vm1198_vm5, %v1196_v27  ;;  %3219 = vmatmul.mubr.msk.f32.vlgmr.msra.gmra.mxu1 %vm1022_vm4, %v1196_v27 }
 0x5a9   :  { %1201 = vst.msk [vmem:[#allocation2 + $0x8] sm:$0x2] %vm1200_vm6, %v1196_v27  ;;  %3222 = vmatpush3.msra.mxu1 %v4046_v36  ;;  %3229 = vmatprep.mubr.msk.f32.mxu1 %vm3483_vm2, %v3482_v56 }
 0x5aa   :  { %3223 = vmatprep.subr.mxu1 %v3482_v56 }
 0x5ab   :  { %3224 = vmatpush3.msra.mxu1 %v4054_v18 }
 0x5ac   :  { %3225 = vmatprep.subr.mxu1 %v3482_v56 }
 0x5ad   :  { %3226 = vmatpush3.msra.mxu1 %v4065_v57 }
 0x5ae   :  { %3227 = vmatprep.subr.mxu1 %v3482_v56 }
 0x5af   :  { %3228 = vmatpush3.msra.mxu1 %v4072_v58 }
 0x5b0   :  { %3230 = vmatmul.mubr.msk.f32.vlgmr.msra.gmra.mxu1 %vm1022_vm4, %v1202_v39  ;;  %3232 = vmatprep.subr.mxu1 %v3482_v56 }
 0x5b1   :  { %3233 = vmatpush3.msra.mxu1 %v4010_v29  ;;  %3240 = vmatprep.mubr.msk.f32.mxu1 %vm3483_vm2, %v3482_v56 }
 0x5b2   :  { %3234 = vmatprep.subr.mxu1 %v3482_v56 }
 0x5b3   :  { %3235 = vmatpush3.msra.mxu1 %v4016_v61 }
 0x5b4   :  { %3236 = vmatprep.subr.mxu1 %v3482_v56 }
 0x5b5   :  { %3237 = vmatpush3.msra.mxu1 %v4023_v14 }
 0x5b6   :  { %3238 = vmatprep.subr.mxu1 %v3482_v56 }
 0x5b7   :  { %3239 = vmatpush3.msra.mxu1 %v4030_v38 }
 0x5b8   :  { %3243 = vmatprep.subr.mxu1 %v3482_v56 }
 0x668   :  { %v1271_v46 = vpop.f32.mrf.mxu1 }
 0x66a   :  { %v3220_v25 = vpop.f32.mrf.mxu1 }
 0x670   :  { %v1344_v21 = vpop.f32.mrf.mxu1 }
 0x671   :  { %v1345_v23 = vadd.f32 %v1344_v21, %v1271_v46 }
 0x672   :  { %v3231_v41 = vpop.f32.mrf.mxu1 }
 0x673   :  { %v1348_v26 = vadd.f32 %v4093_v0, %v1345_v23 }
 0x675   :  { %3417 = vtanh.f32 %v1348_v26  ;;  %v2809_v28 = vmul.f32 -1.442695, %v1348_v26 }
 0x677   :  { %3419 = vpow2.f32 %v2809_v28 }
 0x682   :  { %v3418_v40 = vpop.eup %3417 }
 0x683   :  { %1358 = vrot.lane.b32.xlu0 %v3418_v40, %s3484_s24 }
 0x684   :  { %v3420_v43 = vpop.eup %3419 }
 0x685   :  { %v1352_v10 = vadd.f32 1.0, %v3420_v43  ;;  %v2818_v43 = vld [vmem:[%s4384_s6 + $0x6] sm:$0x3] }
 0x687   :  { %3421 = vrcp.f32 %v1352_v10 }
 0x694   :  { %v3422_v11 = vpop.eup %3421 }
 0x695   :  { %v1356_v12 = vmul.f32 %v3422_v11, %v1187_v32 }
 0x6f5   :  { %v1359_v2 = vpop.permute.xlu0 %1358 }
 0x6f6   :  { %v1361_v22 = vmul.f32 %v3422_v11, %v1359_v2 }
 0x6f8   :  { %1363 = vrot.lane.b32.xlu1 %v1361_v22, %s3485_s9 }
 0x76a   :  { %v1364_v44 = vpop.permute.xlu1 %1363 }
 0x76b   :  { %v1366_v7 = vadd.f32 %v1364_v44, %v1356_v12 }
 0x76d   :  { %3423 = vtanh.f32 %v1366_v7 }
 0x77a   :  { %v3424_v37 = vpop.eup %3423 }
 0x77b   :  { %1369 = vrot.lane.b32.xlu0 %v3424_v37, %s3484_s24 }
 0x7ed   :  { %v1370_v47 = vpop.permute.xlu0 %1369 }
 0x7ee   :  { %v1372_v9 = vmul.f32 %v3422_v11, %v1370_v47 }
 0x7f0   :  { %1374 = vrot.lane.b32.xlu1 %v1372_v9, %s3485_s9 }
 0x862   :  { %v1375_v19 = vpop.permute.xlu1 %1374 }
 0x863   :  { %1377 = vst.msk [vmem:[#allocation2 + $0x1] sm:$0x1] %vm1198_vm5, %v1375_v19  ;;  %3241 = vmatmul.mubr.msk.f32.vlgmr.msra.gmra.mxu1 %vm1022_vm4, %v1375_v19 }
 0x864   :  { %1378 = vst.msk [vmem:[#allocation2 + $0x9] sm:$0x2] %vm1200_vm6, %v1375_v19  ;;  %3244 = vmatpush3.msra.mxu1 %v4046_v36  ;;  %3251 = vmatprep.mubr.msk.f32.mxu1 %vm3483_vm2, %v3482_v56 }
 0x865   :  { %3245 = vmatprep.subr.mxu1 %v3482_v56 }
 0x866   :  { %3246 = vmatpush3.msra.mxu1 %v4054_v18 }
 0x867   :  { %3247 = vmatprep.subr.mxu1 %v3482_v56 }
 0x868   :  { %3248 = vmatpush3.msra.mxu1 %v4065_v57 }
 0x869   :  { %3249 = vmatprep.subr.mxu1 %v3482_v56 }
 0x86a   :  { %3250 = vmatpush3.msra.mxu1 %v4072_v58 }
 0x86b   :  { %3252 = vmatmul.mubr.msk.f32.vlgmr.msra.gmra.mxu1 %vm1022_vm4, %v2810_v48  ;;  %3254 = vmatprep.subr.mxu1 %v3482_v56 }
 0x86c   :  { %3255 = vmatpush3.msra.mxu1 %v4010_v29  ;;  %3262 = vmatprep.mubr.msk.f32.mxu1 %vm3483_vm2, %v3482_v56 }
 0x86d   :  { %3256 = vmatprep.subr.mxu1 %v3482_v56 }
 0x86e   :  { %3257 = vmatpush3.msra.mxu1 %v4016_v61 }
 0x86f   :  { %3258 = vmatprep.subr.mxu1 %v3482_v56 }
 0x870   :  { %3259 = vmatpush3.msra.mxu1 %v4023_v14 }
 0x871   :  { %3260 = vmatprep.subr.mxu1 %v3482_v56 }
 0x872   :  { %3261 = vmatpush3.msra.mxu1 %v4030_v38 }
 0x873   :  { %3265 = vmatprep.subr.mxu1 %v3482_v56 }
 0x923   :  { %v1449_v45 = vpop.f32.mrf.mxu1 }
 0x925   :  { %v3242_v20 = vpop.f32.mrf.mxu1 }
 0x92b   :  { %v1522_v50 = vpop.f32.mrf.mxu1 }
 0x92c   :  { %v1523_v51 = vadd.f32 %v1522_v50, %v1449_v45 }
 0x92d   :  { %v3253_v35 = vpop.f32.mrf.mxu1 }
 0x92e   :  { %v1526_v17 = vadd.f32 %v4093_v0, %v1523_v51  ;;  %v2822_v35 = vld [vmem:[%s4384_s6 + $0x8] sm:$0x3] }
 0x930   :  { %3425 = vtanh.f32 %v1526_v17  ;;  %v2813_v54 = vmul.f32 -1.442695, %v1526_v17 }
 0x932   :  { %3427 = vpow2.f32 %v2813_v54 }
 0x93d   :  { %v3426_v53 = vpop.eup %3425 }
 0x93e   :  { %1536 = vrot.lane.b32.xlu0 %v3426_v53, %s3484_s24 }
 0x93f   :  { %v3428_v33 = vpop.eup %3427 }
 0x940   :  { %v1530_v15 = vadd.f32 1.0, %v3428_v33 }
 0x942   :  { %3429 = vrcp.f32 %v1530_v15 }
 0x94f   :  { %v3430_v60 = vpop.eup %3429 }
 0x950   :  { %v1534_v34 = vmul.f32 %v3430_v60, %v1366_v7 }
 0x9b0   :  { %v1537_v62 = vpop.permute.xlu0 %1536 }
 0x9b1   :  { %v1539_v63 = vmul.f32 %v3430_v60, %v1537_v62 }
 0x9b3   :  { %1541 = vrot.lane.b32.xlu1 %v1539_v63, %s3485_s9 }
 0xa25   :  { %v1542_v55 = vpop.permute.xlu1 %1541 }
 0xa26   :  { %v1544_v16 = vadd.f32 %v1542_v55, %v1534_v34 }
 0xa28   :  { %3431 = vtanh.f32 %v1544_v16 }
 0xa35   :  { %v3432_v1 = vpop.eup %3431 }
 0xa36   :  { %1547 = vrot.lane.b32.xlu0 %v3432_v1, %s3484_s24 }
 0xaa8   :  { %v1548_v3 = vpop.permute.xlu0 %1547 }
 0xaa9   :  { %v1550_v59 = vmul.f32 %v3430_v60, %v1548_v3 }
 0xaab   :  { %1552 = vrot.lane.b32.xlu1 %v1550_v59, %s3485_s9 }
 0xb1d   :  { %v1553_v31 = vpop.permute.xlu1 %1552 }
 0xb1e   :  { %1555 = vst.msk [vmem:[#allocation2 + $0x2] sm:$0x1] %vm1198_vm5, %v1553_v31  ;;  %3263 = vmatmul.mubr.msk.f32.vlgmr.msra.gmra.mxu1 %vm1022_vm4, %v1553_v31 }
 0xb1f   :  { %1556 = vst.msk [vmem:[#allocation2 + $0xa] sm:$0x2] %vm1200_vm6, %v1553_v31  ;;  %3266 = vmatpush3.msra.mxu1 %v4046_v36  ;;  %3273 = vmatprep.mubr.msk.f32.mxu1 %vm3483_vm2, %v3482_v56 }
 0xb20   :  { %3267 = vmatprep.subr.mxu1 %v3482_v56 }
 0xb21   :  { %3268 = vmatpush3.msra.mxu1 %v4054_v18 }
 0xb22   :  { %3269 = vmatprep.subr.mxu1 %v3482_v56 }
 0xb23   :  { %3270 = vmatpush3.msra.mxu1 %v4065_v57 }
 0xb24   :  { %3271 = vmatprep.subr.mxu1 %v3482_v56 }
 0xb25   :  { %3272 = vmatpush3.msra.mxu1 %v4072_v58 }
 0xb26   :  { %3274 = vmatmul.mubr.msk.f32.vlgmr.msra.gmra.mxu1 %vm1022_vm4, %v2814_v4  ;;  %3276 = vmatprep.subr.mxu1 %v3482_v56 }
 0xb27   :  { %3277 = vmatpush3.msra.mxu1 %v4010_v29  ;;  %3284 = vmatprep.mubr.msk.f32.mxu1 %vm3483_vm2, %v3482_v56 }
 0xb28   :  { %3278 = vmatprep.subr.mxu1 %v3482_v56 }
 0xb29   :  { %3279 = vmatpush3.msra.mxu1 %v4016_v61 }
 0xb2a   :  { %3280 = vmatprep.subr.mxu1 %v3482_v56 }
 0xb2b   :  { %3281 = vmatpush3.msra.mxu1 %v4023_v14 }
 0xb2c   :  { %3282 = vmatprep.subr.mxu1 %v3482_v56 }
 0xb2d   :  { %3283 = vmatpush3.msra.mxu1 %v4030_v38 }
 0xb2e   :  { %3287 = vmatprep.subr.mxu1 %v3482_v56 }
 0xbde   :  { %v1627_v5 = vpop.f32.mrf.mxu1 }
 0xbe0   :  { %v3264_v49 = vpop.f32.mrf.mxu1 }
 0xbe6   :  { %v1700_v13 = vpop.f32.mrf.mxu1 }
 0xbe7   :  { %v1701_v6 = vadd.f32 %v1700_v13, %v1627_v5 }
 0xbe8   :  { %v3275_v8 = vpop.f32.mrf.mxu1 }
 0xbe9   :  { %v1704_v52 = vadd.f32 %v4093_v0, %v1701_v6  ;;  %v2826_v8 = vld [vmem:[%s4384_s6 + $0xa] sm:$0x3] }
 0xbeb   :  { %3433 = vtanh.f32 %v1704_v52  ;;  %v2817_v24 = vmul.f32 -1.442695, %v1704_v52 }
 0xbed   :  { %3435 = vpow2.f32 %v2817_v24 }
 0xbf8   :  { %v3434_v32 = vpop.eup %3433 }
 0xbf9   :  { %1714 = vrot.lane.b32.xlu0 %v3434_v32, %s3484_s24 }
 0xbfa   :  { %v3436_v30 = vpop.eup %3435 }
 0xbfb   :  { %v1708_v42 = vadd.f32 1.0, %v3436_v30 }
 0xbfd   :  { %3437 = vrcp.f32 %v1708_v42 }
 0xc0a   :  { %v3438_v27 = vpop.eup %3437 }
 0xc0b   :  { %v1712_v25 = vmul.f32 %v3438_v27, %v1544_v16 }
 0xc6b   :  { %v1715_v39 = vpop.permute.xlu0 %1714 }
 0xc6c   :  { %v1717_v46 = vmul.f32 %v3438_v27, %v1715_v39 }
 0xc6e   :  { %1719 = vrot.lane.b32.xlu1 %v1717_v46, %s3485_s9 }
 0xce0   :  { %v1720_v21 = vpop.permute.xlu1 %1719 }
 0xce1   :  { %v1722_v23 = vadd.f32 %v1720_v21, %v1712_v25 }
 0xce3   :  { %3439 = vtanh.f32 %v1722_v23 }
 0xcf0   :  { %v3440_v41 = vpop.eup %3439 }
 0xcf1   :  { %1725 = vrot.lane.b32.xlu0 %v3440_v41, %s3484_s24 }
 0xd63   :  { %v1726_v26 = vpop.permute.xlu0 %1725 }
 0xd64   :  { %v1728_v40 = vmul.f32 %v3438_v27, %v1726_v26 }
 0xd66   :  { %1730 = vrot.lane.b32.xlu1 %v1728_v40, %s3485_s9 }
 0xdd8   :  { %v1731_v28 = vpop.permute.xlu1 %1730 }
 0xdd9   :  { %1733 = vst.msk [vmem:[#allocation2 + $0x3] sm:$0x1] %vm1198_vm5, %v1731_v28  ;;  %3285 = vmatmul.mubr.msk.f32.vlgmr.msra.gmra.mxu1 %vm1022_vm4, %v1731_v28 }
 0xdda   :  { %1734 = vst.msk [vmem:[#allocation2 + $0xb] sm:$0x2] %vm1200_vm6, %v1731_v28  ;;  %3288 = vmatpush3.msra.mxu1 %v4046_v36  ;;  %3295 = vmatprep.mubr.msk.f32.mxu1 %vm3483_vm2, %v3482_v56 }
 0xddb   :  { %3289 = vmatprep.subr.mxu1 %v3482_v56 }
 0xddc   :  { %3290 = vmatpush3.msra.mxu1 %v4054_v18 }
 0xddd   :  { %3291 = vmatprep.subr.mxu1 %v3482_v56 }
 0xdde   :  { %3292 = vmatpush3.msra.mxu1 %v4065_v57 }
 0xddf   :  { %3293 = vmatprep.subr.mxu1 %v3482_v56 }
 0xde0   :  { %3294 = vmatpush3.msra.mxu1 %v4072_v58 }
 0xde1   :  { %3296 = vmatmul.mubr.msk.f32.vlgmr.msra.gmra.mxu1 %vm1022_vm4, %v2818_v43  ;;  %3309 = vmatprep.subr.mxu1 %v3482_v56 }
 0xde2   :  { %3310 = vmatpush3.msra.mxu1 %v4046_v36  ;;  %3317 = vmatprep.mubr.msk.f32.mxu1 %vm3483_vm2, %v3482_v56 }
 0xde3   :  { %3311 = vmatprep.subr.mxu1 %v3482_v56 }
 0xde4   :  { %3312 = vmatpush3.msra.mxu1 %v4054_v18 }
 0xde5   :  { %3313 = vmatprep.subr.mxu1 %v3482_v56 }
 0xde6   :  { %3314 = vmatpush3.msra.mxu1 %v4065_v57 }
 0xde7   :  { %3315 = vmatprep.subr.mxu1 %v3482_v56 }
 0xde8   :  { %3316 = vmatpush3.msra.mxu1 %v4072_v58 }
 0xde9   :  { %3331 = vmatprep.subr.mxu1 %v3482_v56  ;;  %3318 = vmatmul.mubr.msk.f32.vlgmr.msra.gmra.mxu1 %vm1022_vm4, %v2822_v35 }
 0xdea   :  { %3332 = vmatpush3.msra.mxu1 %v4046_v36  ;;  %3339 = vmatprep.mubr.msk.f32.mxu1 %vm3483_vm2, %v3482_v56 }
 0xdeb   :  { %3333 = vmatprep.subr.mxu1 %v3482_v56 }
 0xdec   :  { %3334 = vmatpush3.msra.mxu1 %v4054_v18 }
 0xded   :  { %3335 = vmatprep.subr.mxu1 %v3482_v56 }
 0xdee   :  { %3336 = vmatpush3.msra.mxu1 %v4065_v57 }
 0xdef   :  { %3337 = vmatprep.subr.mxu1 %v3482_v56 }
 0xdf0   :  { %3338 = vmatpush3.msra.mxu1 %v4072_v58 }
 0xdf1   :  { %3353 = vmatprep.subr.mxu1 %v3482_v56  ;;  %3340 = vmatmul.mubr.msk.f32.vlgmr.msra.gmra.mxu1 %vm1022_vm4, %v2826_v8 }
 0xdf2   :  { %3354 = vmatpush3.msra.mxu1 %v4046_v36  ;;  %3361 = vmatprep.mubr.msk.f32.mxu1 %vm3483_vm2, %v3482_v56 }
 0xdf3   :  { %3355 = vmatprep.subr.mxu1 %v3482_v56 }
 0xdf4   :  { %3356 = vmatpush3.msra.mxu1 %v4054_v18 }
 0xdf5   :  { %3357 = vmatprep.subr.mxu1 %v3482_v56 }
 0xdf6   :  { %3358 = vmatpush3.msra.mxu1 %v4065_v57 }
 0xdf7   :  { %3359 = vmatprep.subr.mxu1 %v3482_v56 }
 0xdf8   :  { %3360 = vmatpush3.msra.mxu1 %v4072_v58 }
 0xdf9   :  { %3375 = vmatprep.subr.mxu1 %v3482_v56 }
 0xe99   :  { %v1805_v10 = vpop.f32.mrf.mxu1 }
 0xe9b   :  { %v3286_v11 = vpop.f32.mrf.mxu1 }
 0xea1   :  { %v1878_v2 = vpop.f32.mrf.mxu1 }
 0xea2   :  { %v1879_v22 = vadd.f32 %v1878_v2, %v1805_v10 }
 0xea3   :  { %v3297_v12 = vpop.f32.mrf.mxu1 }
 0xea4   :  { %v1882_v44 = vadd.f32 %v4093_v0, %v1879_v22  ;;  %v2830_v12 = vld [vmem:[%s4384_s6 + $0xc] sm:$0x3] }
 0xea5   :  { %3362 = vmatmul.mubr.msk.f32.vlgmr.msra.gmra.mxu1 %vm1022_vm4, %v2830_v12 }
 0xea6   :  { %3441 = vtanh.f32 %v1882_v44  ;;  %v2821_v37 = vmul.f32 -1.442695, %v1882_v44  ;;  %3376 = vmatpush3.msra.mxu1 %v4046_v36  ;;  %3383 = vmatprep.mubr.msk.f32.mxu1 %vm3483_vm2, %v3482_v56 }
 0xea7   :  { %3377 = vmatprep.subr.mxu1 %v3482_v56 }
 0xea8   :  { %3443 = vpow2.f32 %v2821_v37  ;;  %3378 = vmatpush3.msra.mxu1 %v4054_v18 }
 0xea9   :  { %v2056_v33 = vpop.f32.mrf.mxu1  ;;  %3379 = vmatprep.subr.mxu1 %v3482_v56 }
 0xeaa   :  { %3380 = vmatpush3.msra.mxu1 %v4065_v57 }
 0xeab   :  { %v3319_v15 = vpop.f32.mrf.mxu1  ;;  %3381 = vmatprep.subr.mxu1 %v3482_v56 }
 0xeac   :  { %3382 = vmatpush3.msra.mxu1 %v4072_v58 }
 0xeb1   :  { %v2234_v30 = vpop.f32.mrf.mxu1 }
 0xeb3   :  { %v3442_v7 = vpop.eup %3441  ;;  %v3341_v42 = vpop.f32.mrf.mxu1 }
 0xeb4   :  { %1892 = vrot.lane.b32.xlu0 %v3442_v7, %s3484_s24 }
 0xeb5   :  { %v3444_v47 = vpop.eup %3443 }
 0xeb6   :  { %v1886_v9 = vadd.f32 1.0, %v3444_v47 }
 0xeb8   :  { %3445 = vrcp.f32 %v1886_v9 }
 0xec5   :  { %v3446_v19 = vpop.eup %3445 }
 0xec6   :  { %v1890_v20 = vmul.f32 %v3446_v19, %v1722_v23 }
 0xf26   :  { %v1893_v48 = vpop.permute.xlu0 %1892 }
 0xf27   :  { %v1895_v45 = vmul.f32 %v3446_v19, %v1893_v48 }
 0xf29   :  { %1897 = vrot.lane.b32.xlu1 %v1895_v45, %s3485_s9 }
 0xf65   :  { %v2412_v37 = vpop.f32.mrf.mxu1 }
 0xf67   :  { %v3363_v47 = vpop.f32.mrf.mxu1 }
 0xf9b   :  { %v1898_v50 = vpop.permute.xlu1 %1897 }
 0xf9c   :  { %v1900_v51 = vadd.f32 %v1898_v50, %v1890_v20 }
 0xf9e   :  { %3447 = vtanh.f32 %v1900_v51 }
 0xfab   :  { %v3448_v17 = vpop.eup %3447 }
 0xfac   :  { %1903 = vrot.lane.b32.xlu0 %v3448_v17, %s3484_s24  ;;  %v2834_v17 = vld [vmem:[%s4384_s6 + $0xe] sm:$0x3] }
 0xfad   :  { %3384 = vmatmul.mubr.msk.f32.vlgmr.msra.gmra.mxu1 %vm1022_vm4, %v2834_v17 }
0x101e   :  { %v1904_v53 = vpop.permute.xlu0 %1903 }
0x101f   :  { %v1906_v54 = vmul.f32 %v3446_v19, %v1904_v53 }
0x1021   :  { %1908 = vrot.lane.b32.xlu1 %v1906_v54, %s3485_s9 }
0x106d   :  { %v2590_v15 = vpop.f32.mrf.mxu1 }
0x1093   :  { %v1909_v60 = vpop.permute.xlu1 %1908 }
0x1094   :  { %1911 = vst.msk [vmem:[#allocation2 + $0x4] sm:$0x1] %vm1198_vm5, %v1909_v60  ;;  %3307 = vmatmul.mubr.msk.f32.vlgmr.msra.gmra.mxu0 %vm1022_vm4, %v1909_v60 }
0x1095   :  { %1912 = vst.msk [vmem:[#allocation2 + $0xc] sm:$0x2] %vm1200_vm6, %v1909_v60  ;;  %3321 = vmatpush3.msra.mxu0 %v4010_v29  ;;  %3328 = vmatprep.mubr.msk.f32.mxu0 %vm3483_vm2, %v3482_v56  ;;  %v3385_v60 = vpop.f32.mrf.mxu1 }
0x1096   :  { %3322 = vmatprep.subr.mxu0 %v3482_v56 }
0x1097   :  { %3323 = vmatpush3.msra.mxu0 %v4016_v61 }
0x1098   :  { %3324 = vmatprep.subr.mxu0 %v3482_v56 }
0x1099   :  { %3325 = vmatpush3.msra.mxu0 %v4023_v14 }
0x109a   :  { %3326 = vmatprep.subr.mxu0 %v3482_v56 }
0x109b   :  { %3327 = vmatpush3.msra.mxu0 %v4030_v38 }
0x109c   :  { %3342 = vmatprep.subr.mxu0 %v3482_v56 }
0x1154   :  { %v1983_v62 = vpop.f32.mrf.mxu0 }
0x1155   :  { %v2057_v63 = vadd.f32 %v2056_v33, %v1983_v62  ;;  %v2631_v62 = vld [vmem:[%s4385_s10 + $0x18] sm:$0xff] }
0x1156   :  { %v3308_v34 = vpop.f32.mrf.mxu0 }
0x1157   :  { %v2060_v55 = vadd.f32 %v4093_v0, %v2057_v63  ;;  %v2630_v34 = vld [vmem:[%s4385_s10 + $0x10] sm:$0xff] }
0x1159   :  { %3449 = vtanh.f32 %v2060_v55  ;;  %v2825_v1 = vmul.f32 -1.442695, %v2060_v55  ;;  %v2629_v55 = vld [vmem:[%s4385_s10 + $0x8] sm:$0xff] }
0x115b   :  { %3451 = vpow2.f32 %v2825_v1 }
0x1166   :  { %v3450_v16 = vpop.eup %3449 }
0x1167   :  { %2070 = vrot.lane.b32.xlu0 %v3450_v16, %s3484_s24  ;;  %v2628_v16 = vld [vmem:[%s4385_s10] sm:$0xff] }
0x1168   :  { %v3452_v3 = vpop.eup %3451 }
0x1169   :  { %v2064_v59 = vadd.f32 1.0, %v3452_v3 }
0x116b   :  { %3453 = vrcp.f32 %v2064_v59 }
0x1178   :  { %v3454_v31 = vpop.eup %3453 }
0x1179   :  { %v2068_v49 = vmul.f32 %v3454_v31, %v1900_v51 }
0x11d9   :  { %v2071_v4 = vpop.permute.xlu0 %2070 }
0x11da   :  { %v2073_v5 = vmul.f32 %v3454_v31, %v2071_v4 }
0x11dc   :  { %2075 = vrot.lane.b32.xlu1 %v2073_v5, %s3485_s9  ;;  %v2838_v5 = vld [vmem:[%s4386_s11] ss:$0 sm:$0xff] }
0x124e   :  { %v2076_v13 = vpop.permute.xlu1 %2075 }
0x124f   :  { %v2078_v6 = vadd.f32 %v2076_v13, %v2068_v49 }
0x1251   :  { %3455 = vtanh.f32 %v2078_v6 }
0x125e   :  { %v3456_v52 = vpop.eup %3455 }
0x125f   :  { %2081 = vrot.lane.b32.xlu0 %v3456_v52, %s3484_s24 }
0x12d1   :  { %v2082_v32 = vpop.permute.xlu0 %2081 }
0x12d2   :  { %v2084_v24 = vmul.f32 %v3454_v31, %v2082_v32 }
0x12d4   :  { %2086 = vrot.lane.b32.xlu1 %v2084_v24, %s3485_s9 }
0x1346   :  { %v2087_v27 = vpop.permute.xlu1 %2086 }
0x1347   :  { %2089 = vst.msk [vmem:[#allocation2 + $0x5] sm:$0x1] %vm1198_vm5, %v2087_v27  ;;  %3329 = vmatmul.mubr.msk.f32.vlgmr.msra.gmra.mxu0 %vm1022_vm4, %v2087_v27 }
0x1348   :  { %2090 = vst.msk [vmem:[#allocation2 + $0xd] sm:$0x2] %vm1200_vm6, %v2087_v27  ;;  %3343 = vmatpush3.msra.mxu0 %v4010_v29  ;;  %3350 = vmatprep.mubr.msk.f32.mxu0 %vm3483_vm2, %v3482_v56 }
0x1349   :  { %3344 = vmatprep.subr.mxu0 %v3482_v56 }
0x134a   :  { %3345 = vmatpush3.msra.mxu0 %v4016_v61 }
0x134b   :  { %3346 = vmatprep.subr.mxu0 %v3482_v56 }
0x134c   :  { %3347 = vmatpush3.msra.mxu0 %v4023_v14 }
0x134d   :  { %3348 = vmatprep.subr.mxu0 %v3482_v56 }
0x134e   :  { %3349 = vmatpush3.msra.mxu0 %v4030_v38 }
0x134f   :  { %3364 = vmatprep.subr.mxu0 %v3482_v56 }
0x1407   :  { %v2161_v39 = vpop.f32.mrf.mxu0 }
0x1408   :  { %v2235_v46 = vadd.f32 %v2234_v30, %v2161_v39 }
0x1409   :  { %v3330_v25 = vpop.f32.mrf.mxu0 }
0x140a   :  { %v2238_v21 = vadd.f32 %v4093_v0, %v2235_v46 }
0x140c   :  { %3457 = vtanh.f32 %v2238_v21  ;;  %v2829_v41 = vmul.f32 -1.442695, %v2238_v21 }
0x140e   :  { %3459 = vpow2.f32 %v2829_v41 }
0x1419   :  { %v3458_v23 = vpop.eup %3457 }
0x141a   :  { %2248 = vrot.lane.b32.xlu0 %v3458_v23, %s3484_s24 }
0x141b   :  { %v3460_v26 = vpop.eup %3459 }
0x141c   :  { %v2242_v40 = vadd.f32 1.0, %v3460_v26 }
0x141e   :  { %3461 = vrcp.f32 %v2242_v40 }
0x142b   :  { %v3462_v28 = vpop.eup %3461 }
0x142c   :  { %v2246_v11 = vmul.f32 %v3462_v28, %v2078_v6 }
0x148c   :  { %v2249_v43 = vpop.permute.xlu0 %2248 }
0x148d   :  { %v2251_v10 = vmul.f32 %v3462_v28, %v2249_v43 }
0x148f   :  { %2253 = vrot.lane.b32.xlu1 %v2251_v10, %s3485_s9 }
0x1501   :  { %v2254_v2 = vpop.permute.xlu1 %2253 }
0x1502   :  { %v2256_v22 = vadd.f32 %v2254_v2, %v2246_v11 }
0x1504   :  { %3463 = vtanh.f32 %v2256_v22 }
0x1511   :  { %v3464_v44 = vpop.eup %3463 }
0x1512   :  { %2259 = vrot.lane.b32.xlu0 %v3464_v44, %s3484_s24 }
0x1584   :  { %v2260_v7 = vpop.permute.xlu0 %2259 }
0x1585   :  { %v2262_v36 = vmul.f32 %v3462_v28, %v2260_v7 }
0x1587   :  { %2264 = vrot.lane.b32.xlu1 %v2262_v36, %s3485_s9 }
0x15f9   :  { %v2265_v9 = vpop.permute.xlu1 %2264 }
0x15fa   :  { %2267 = vst.msk [vmem:[#allocation2 + $0x6] sm:$0x1] %vm1198_vm5, %v2265_v9  ;;  %3351 = vmatmul.mubr.msk.f32.vlgmr.msra.gmra.mxu0 %vm1022_vm4, %v2265_v9 }
0x15fb   :  { %2268 = vst.msk [vmem:[#allocation2 + $0xe] sm:$0x2] %vm1200_vm6, %v2265_v9  ;;  %3365 = vmatpush3.msra.mxu0 %v4010_v29  ;;  %3372 = vmatprep.mubr.msk.f32.mxu0 %vm3483_vm2, %v3482_v56 }
0x15fc   :  { %3366 = vmatprep.subr.mxu0 %v3482_v56 }
0x15fd   :  { %3367 = vmatpush3.msra.mxu0 %v4016_v61 }
0x15fe   :  { %3368 = vmatprep.subr.mxu0 %v3482_v56 }
0x15ff   :  { %3369 = vmatpush3.msra.mxu0 %v4023_v14 }
0x1600   :  { %3370 = vmatprep.subr.mxu0 %v3482_v56 }
0x1601   :  { %3371 = vmatpush3.msra.mxu0 %v4030_v38 }
0x1602   :  { %3386 = vmatprep.subr.mxu0 %v3482_v56 }
0x16ba   :  { %v2339_v18 = vpop.f32.mrf.mxu0 }
0x16bb   :  { %v2413_v57 = vadd.f32 %v2412_v37, %v2339_v18 }
0x16bc   :  { %v3352_v29 = vpop.f32.mrf.mxu0 }
0x16bd   :  { %v2416_v58 = vadd.f32 %v4093_v0, %v2413_v57 }
0x16bf   :  { %3465 = vtanh.f32 %v2416_v58  ;;  %v2833_v61 = vmul.f32 -1.442695, %v2416_v58 }
0x16c1   :  { %3467 = vpow2.f32 %v2833_v61 }
0x16cc   :  { %v3466_v19 = vpop.eup %3465 }
0x16cd   :  { %2426 = vrot.lane.b32.xlu0 %v3466_v19, %s3484_s24 }
0x16ce   :  { %v3468_v48 = vpop.eup %3467 }
0x16cf   :  { %v2420_v45 = vadd.f32 1.0, %v3468_v48 }
0x16d1   :  { %3469 = vrcp.f32 %v2420_v45 }
0x16de   :  { %v3470_v14 = vpop.eup %3469 }
0x16df   :  { %v2424_v38 = vmul.f32 %v3470_v14, %v2256_v22 }
0x173f   :  { %v2427_v20 = vpop.permute.xlu0 %2426 }
0x1740   :  { %v2429_v50 = vmul.f32 %v3470_v14, %v2427_v20 }
0x1742   :  { %2431 = vrot.lane.b32.xlu1 %v2429_v50, %s3485_s9 }
0x17b4   :  { %v2432_v51 = vpop.permute.xlu1 %2431 }
0x17b5   :  { %v2434_v35 = vadd.f32 %v2432_v51, %v2424_v38 }
0x17b7   :  { %3471 = vtanh.f32 %v2434_v35 }
0x17c4   :  { %v3472_v53 = vpop.eup %3471 }
0x17c5   :  { %2437 = vrot.lane.b32.xlu0 %v3472_v53, %s3484_s24 }
0x1837   :  { %v2438_v54 = vpop.permute.xlu0 %2437 }
0x1838   :  { %v2440_v33 = vmul.f32 %v3470_v14, %v2438_v54 }
0x183a   :  { %2442 = vrot.lane.b32.xlu1 %v2440_v33, %s3485_s9 }
0x18ac   :  { %v2443_v63 = vpop.permute.xlu1 %2442 }
0x18ad   :  { %2445 = vst.msk [vmem:[#allocation2 + $0x7] sm:$0x1] %vm1198_vm5, %v2443_v63  ;;  %3373 = vmatmul.mubr.msk.f32.vlgmr.msra.gmra.mxu0 %vm1022_vm4, %v2443_v63 }
0x18ae   :  { %2446 = vst.msk [vmem:[#allocation2 + $0xf] sm:$0x2] %vm1200_vm6, %v2443_v63  ;;  %3387 = vmatpush3.msra.mxu0 %v2631_v62  ;;  %3394 = vmatprep.mubr.msk.f32.mxu0 %vm3483_vm2, %v3482_v56 }
0x18af   :  { %3388 = vmatprep.subr.mxu0 %v3482_v56 }
0x18b0   :  { %3389 = vmatpush3.msra.mxu0 %v2630_v34 }
0x18b1   :  { %3390 = vmatprep.subr.mxu0 %v3482_v56 }
0x18b2   :  { %3391 = vmatpush3.msra.mxu0 %v2629_v55 }
0x18b3   :  { %3392 = vmatprep.subr.mxu0 %v3482_v56 }
0x18b4   :  { %3393 = vmatpush3.msra.mxu0 %v2628_v16  ;;  %v2625_v1 = vld [vmem:[#allocation2] sm:$0xff] }
0x18b5   :  { %3395 = vmatmul.mubr.msk.f32.vlgmr.msra.gmra.mxu0 %vm1022_vm4, %v2625_v1 }
0x18b6   :  { %3397 = vmatprep.mubr.msk.f32.mxu0 %vm3483_vm2, %v3482_v56 }
0x196d   :  { %v2517_v3 = vpop.f32.mrf.mxu0 }
0x196e   :  { %v2591_v59 = vadd.f32 %v2590_v15, %v2517_v3 }
0x196f   :  { %v3374_v31 = vpop.f32.mrf.mxu0 }
0x1970   :  { %v2594_v4 = vadd.f32 %v4093_v0, %v2591_v59 }
0x1972   :  { %3473 = vtanh.f32 %v2594_v4  ;;  %v2837_v52 = vmul.f32 -1.442695, %v2594_v4 }
0x1974   :  { %3475 = vpow2.f32 %v2837_v52 }
0x1975   :  { %v2714_v49 = vpop.f32.mrf.mxu0 }
0x1976   :  { %v2715_v13 = vadd.f32 %v2838_v5, %v2714_v49 }
0x1977   :  { %v3396_v6 = vpop.f32.mrf.mxu0 }
0x1978   :  { %2728 = vst.msk [vmem:[%s4387_s12] sm:$0xff] %vm1022_vm4, %v2715_v13 }
0x197f   :  { %v3474_v8 = vpop.eup %3473 }
0x1980   :  { %2604 = vrot.lane.b32.xlu0 %v3474_v8, %s3484_s24 }
0x1981   :  { %v3476_v32 = vpop.eup %3475 }
0x1982   :  { %v2598_v0 = vadd.f32 1.0, %v3476_v32 }
0x1984   :  { %3477 = vrcp.f32 %v2598_v0 }
0x1991   :  { %v3478_v24 = vpop.eup %3477 }
0x1992   :  { %v2602_v27 = vmul.f32 %v3478_v24, %v2434_v35 }
0x19f2   :  { %v2605_v30 = vpop.permute.xlu0 %2604 }
0x19f3   :  { %v2607_v42 = vmul.f32 %v3478_v24, %v2605_v30 }
0x19f5   :  { %2609 = vrot.lane.b32.xlu1 %v2607_v42, %s3485_s9 }
0x1a67   :  { %v2610_v39 = vpop.permute.xlu1 %2609 }
0x1a68   :  { %v2612_v46 = vadd.f32 %v2610_v39, %v2602_v27 }
0x1a6a   :  { %3479 = vtanh.f32 %v2612_v46 }
0x1a77   :  { %v3480_v25 = vpop.eup %3479 }
0x1a78   :  { %2615 = vrot.lane.b32.xlu0 %v3480_v25, %s3484_s24 }
0x1aea   :  { %v2616_v21 = vpop.permute.xlu0 %2615 }
0x1aeb   :  { %v2618_v23 = vmul.f32 %v3478_v24, %v2616_v21 }
0x1aed   :  { %2620 = vrot.lane.b32.xlu1 %v2618_v23, %s3485_s9 }
0x1b5f   :  { %v2621_v41 = vpop.permute.xlu1 %2620 }
0x1b60   :  { %2623 = vst.msk [vmem:[#allocation2 + $0x8] sm:$0x1] %vm1198_vm5, %v2621_v41 }
0x1b61   :  { %2624 = vst.msk [vmem:[#allocation2 + $0x10] sm:$0x2] %vm1200_vm6, %v2621_v41 }
0x1b67   :  { %v2626_v26 = vld [vmem:[#allocation2 + $0x8] sm:$0xff] }
0x1b68   :  { %3398 = vmatmul.mubr.msk.f32.gmra.mxu0 %vm1022_vm4, %v2626_v26  ;;  %v2627_v40 = vld [vmem:[#allocation2 + $0x10] sm:$0x3] }
0x1b69   :  { %3400 = vmatprep.mubr.msk.f32.mxu0 %vm3483_vm2, %v3482_v56 }
0x1b6c   :  { %3401 = vmatmul.mubr.msk.f32.gmra.mxu0 %vm1022_vm4, %v2627_v40 }
0x1c28   :  { %v2719_v28 = vpop.f32.mrf.mxu0 }
0x1c29   :  { %v2720_v43 = vadd.f32 %v2838_v5, %v2719_v28 }
0x1c2a   :  { %v3399_v10 = vpop.f32.mrf.mxu0 }
0x1c2b   :  { %2729 = vst.msk [vmem:[%s4387_s12 + $0x8] sm:$0xff] %vm1022_vm4, %v2720_v43 }
0x1c2c   :  { %v2724_v11 = vpop.f32.mrf.mxu0 }
0x1c2d   :  { %v2725_v2 = vadd.f32 %v2838_v5, %v2724_v11 }
0x1c2e   :  { %v3402_v22 = vpop.f32.mrf.mxu0 }
0x1c2f   :  { %2731 = vst.msk [vmem:[%s4387_s12 + $0x10] sm:$0x3] %vm2730_vm7, %v2725_v2 }

</bundles_post_ra>
